<compile_context>
chip_gen: v5e
topology: v5e:2x2
jax: 0.10.0
libtpu: 0.0.40
codegen_flags: <defaults>
</compile_context>

<pallas_src>
import jax
import jax.numpy as jnp
import numpy as np
from jax.experimental import pallas as pl
from jax.experimental.pallas import tpu as pltpu


# ---------------------------------------------------------------------------
# Kernel
# ---------------------------------------------------------------------------
def _weighted_sum_and_max_kernel(feats_ref, counts_ref, w_ref, b_ref, out_ref,
                                 sum_acc, max_acc):
    # feats_ref : (Gb, Nb, F)  f32/bf16  VMEM
    # counts_ref: (Gb, 1)      int32     VMEM   (valid-node count per graph)
    # w_ref     : (1, F)       f32       VMEM   (lane-dense weight row, resident)
    # b_ref     : (1, 1)       f32       SMEM   (scalar bias)
    # out_ref   : (Gb, 2, F)   feats dt  VMEM   (slot 0 = weighted sum, slot 1 = max)
    # sum_acc   : (Gb, F)      f32       VMEM scratch (running weighted sum)
    # max_acc   : (Gb, F)      f32       VMEM scratch (running max)
    gb, nb, f = feats_ref.shape
    n_step = pl.program_id(1)
    n_last = pl.num_programs(1) - 1

    @pl.when(n_step == 0)
    def _():
        sum_acc[...] = jnp.zeros_like(sum_acc)
        max_acc[...] = jnp.full_like(max_acc, -jnp.inf)

    # Upcast the tile once (bf16 HBM traffic, f32 VPU/EUP math — safe on v5e too).
    x = feats_ref[...].astype(jnp.float32)                     # (Gb, Nb, F)
    counts = counts_ref[...]                                   # (Gb, 1) int32

    # Validity mask built directly in the (Gb, Nb, 1) layout: pure VPU compare.
    node_idx = n_step * nb + jax.lax.broadcasted_iota(jnp.int32, (gb, nb, 1), 1)
    valid3 = node_idx < counts[:, :, None]                     # (Gb, Nb, 1) bool

    # Per-node scalar weight: VPU multiply + lane reduce over F, sigmoid on the EUP.
    w_row = w_ref[...].astype(jnp.float32)                     # (1, F)
    logits = jnp.sum(x * w_row[None, :, :], axis=-1, keepdims=True) + b_ref[0, 0]
    node_w = jax.nn.sigmoid(logits)                            # (Gb, Nb, 1)

    # Weighted sum over valid nodes (NaN-safe: where, not multiply-by-mask).
    sum_acc[...] += jnp.sum(jnp.where(valid3, node_w * x, 0.0), axis=1)

    # Running max over valid nodes.
    max_acc[...] = jnp.maximum(
        max_acc[...],
        jnp.max(jnp.where(valid3, x, -jnp.inf), axis=1))

    @pl.when(n_step == n_last)
    def _():
        # DGL readout on an empty graph returns 0, not -inf.
        has_nodes = counts > 0                                 # (Gb, 1)
        h_max = jnp.where(has_nodes, max_acc[...], 0.0)        # (Gb, F)
        out_ref[:, 0, :] = sum_acc[...].astype(out_ref.dtype)
        out_ref[:, 1, :] = h_max.astype(out_ref.dtype)


# ---------------------------------------------------------------------------
# Generation-aware tiling
# ---------------------------------------------------------------------------
def _round_up(x, m):
    return ((x + m - 1) // m) * m


def _vmem_config():
    """(feats-block budget bytes, vmem_limit_bytes, preferred min graph-axis steps)."""
    try:
        vmem_bytes = int(pltpu.get_tpu_info().vmem_capacity_bytes)
    except Exception:
        vmem_bytes = 64 << 20  # conservative default (v7x-sized)
    if vmem_bytes <= (64 << 20):
        # v7x: 64 MiB / TensorCore, 2 TCs share the grid -> keep >= 4 balanced steps.
        return (12 << 20, 44 << 20, 4)
    # v5e / v6e: 128 MiB physical VMEM -> bigger blocks amortize per-step overhead.
    return (24 << 20, 64 << 20, 2)


def _choose_tiling(G, N, F, itemsize):
    """Returns (Gb, Nb, Gpad, Npad, vmem_limit_bytes)."""
    budget, vmem_limit, min_steps = _vmem_config()
    g_pad8 = _round_up(max(G, 1), 8)
    bytes_per_graph = N * F * itemsize

    gb_candidates = list(range(8, g_pad8 + 1, 8))
    fitting = [gb for gb in gb_candidates if gb * bytes_per_graph <= budget]
    if fitting:
        nb = N
        multi = [gb for gb in fitting if -(-g_pad8 // gb) >= min_steps]
        gb = max(multi if multi else fitting)
    else:
        # A single 8-graph row of full-N feats exceeds the budget: tile the node axis.
        gb = 8
        max_nb = max(8, (budget // (gb * F * itemsize)) // 8 * 8)
        nb = min(_round_up(N, 8), max_nb)

    g_pad = _round_up(max(G, 1), gb)
    n_pad = _round_up(N, nb)
    return gb, nb, g_pad, n_pad, vmem_limit


# ---------------------------------------------------------------------------
# Wrapper
# ---------------------------------------------------------------------------
def weighted_sum_and_max(feats, num_valid_nodes, weight, bias):
    """feats: (G, N, F) f32/bf16, num_valid_nodes: (G,) int,
    weight: (1, F) / (F,) / (F, 1), bias: scalar-like.
    Returns (G, 2F) = concat([weighted_sum, max], axis=1) in feats.dtype."""
    G, N, F = feats.shape
    dtype = feats.dtype
    itemsize = int(jnp.dtype(dtype).itemsize)

    Gb, Nb, Gpad, Npad, vmem_limit = _choose_tiling(G, N, F, itemsize)

    counts = jnp.asarray(num_valid_nodes).reshape(G).astype(jnp.int32)
    if Gpad != G or Npad != N:
        feats = jnp.pad(feats, ((0, Gpad - G), (0, Npad - N), (0, 0)))
    if Gpad != G:
        counts = jnp.pad(counts, (0, Gpad - G))      # padded graphs -> count 0 -> output 0
    counts = counts.reshape(Gpad, 1)

    w_row = jnp.asarray(weight).reshape(1, F).astype(jnp.float32)
    b = jnp.asarray(bias).reshape(1, 1).astype(jnp.float32)

    out = pl.pallas_call(
        _weighted_sum_and_max_kernel,
        out_shape=jax.ShapeDtypeStruct((Gpad, 2, F), dtype),
        grid_spec=pltpu.PrefetchScalarGridSpec(
            num_scalar_prefetch=0,
            grid=(Gpad // Gb, Npad // Nb),
            in_specs=[
                pl.BlockSpec((Gb, Nb, F), lambda g, n: (g, n, 0)),       # feats tile
                pl.BlockSpec((Gb, 1), lambda g, n: (g, 0)),              # node counts
                pl.BlockSpec((1, F), lambda g, n: (0, 0)),               # weight row (resident)
                pl.BlockSpec(memory_space=pltpu.MemorySpace.SMEM),       # scalar bias
            ],
            out_specs=pl.BlockSpec((Gb, 2, F), lambda g, n: (g, 0, 0)),  # accumulator output
            scratch_shapes=[
                pltpu.VMEM((Gb, F), jnp.float32),   # running weighted sum
                pltpu.VMEM((Gb, F), jnp.float32),   # running max
            ],
        ),
        compiler_params=pltpu.CompilerParams(
            dimension_semantics=("parallel", "arbitrary"),
            vmem_limit_bytes=vmem_limit,
        ),
    )(feats, counts, w_row, b)

    return out.reshape(Gpad, 2 * F)[:G]


# ---------------------------------------------------------------------------
# Pure-JAX reference
# ---------------------------------------------------------------------------
def _reference(feats, num_valid_nodes, weight, bias):
    G, N, F = feats.shape
    f32 = feats.astype(jnp.float32)
    valid = (jnp.arange(N)[None, :] < num_valid_nodes[:, None])[..., None]    # (G, N, 1)
    logits = f32 @ jnp.asarray(weight).reshape(F, 1).astype(jnp.float32) \
             + jnp.asarray(bias).reshape(()).astype(jnp.float32)
    w = jax.nn.sigmoid(logits)
    h_sum = jnp.sum(jnp.where(valid, w * f32, 0.0), axis=1)
    h_max = jnp.max(jnp.where(valid, f32, -jnp.inf), axis=1)
    h_max = jnp.where(num_valid_nodes[:, None] > 0, h_max, 0.0)
    return jnp.concatenate([h_sum, h_max], axis=1)


if __name__ == "__main__":
    # 16 graphs, 16 padded nodes each, in_feats = 128 (lane-dense feature dim).
    G, N, F = 16, 16, 128

    key = jax.random.PRNGKey(0)
    k_feats, k_valid, k_w, k_b = jax.random.split(key, 4)

    feats = jax.random.normal(k_feats, (G, N, F), dtype=jnp.float32)
    # each graph has between 1 and N valid nodes (rest is padding)
    num_valid = jax.random.randint(k_valid, (G,), 1, N + 1)

    # deterministic init of nn.Linear(in_feats, 1): weight (1, F), bias scalar
    weight = jax.random.normal(k_w, (1, F), dtype=jnp.float32) * (1.0 / np.sqrt(F))
    bias = jax.random.normal(k_b, (1, 1), dtype=jnp.float32) * 0.1

    out = weighted_sum_and_max(feats, num_valid, weight, bias)
    out = jax.block_until_ready(out)

    ref = _reference(feats, num_valid, weight, bias)
    np.testing.assert_allclose(np.asarray(out), np.asarray(ref), rtol=1e-4, atol=1e-4)

    print("KERNEL_OK")
</pallas_src>

<mosaic_0001>
module attributes {stable_mosaic.version = 11 : i64} {
  func.func @_weighted_sum_and_max_kernel(%arg0: i32, %arg1: i32, %arg2: memref<16x16x128xf32, #tpu.memory_space<vmem>>, %arg3: memref<16x1xi32, #tpu.memory_space<vmem>>, %arg4: memref<1x128xf32, #tpu.memory_space<vmem>>, %arg5: memref<1x1xf32, #tpu.memory_space<smem>>, %arg6: memref<16x2x128xf32, #tpu.memory_space<vmem>>, %arg7: memref<16x128xf32, #tpu.memory_space<vmem>>, %arg8: memref<16x128xf32, #tpu.memory_space<vmem>>) attributes {dimension_semantics = [#tpu.dimension_semantics<parallel>, #tpu.dimension_semantics<arbitrary>], iteration_bounds = array<i64: 1, 1>, scalar_prefetch = 0 : i64, scratch_operands = 2 : i64, tpu.core_type = #tpu.core_type<tc>, window_params = [{transform_indices = @transform_0, window_bounds = array<i64: 16, 16, 128>}, {transform_indices = @transform_1, window_bounds = array<i64: 16, 1>}, {pipeline_mode = #tpu.pipeline_mode<synchronous>, transform_indices = @transform_2, window_bounds = array<i64: 1, 128>}, {transform_indices = @transform_3, window_bounds = array<i64: 1, 1>}, {transform_indices = @transform_4, window_bounds = array<i64: 16, 2, 128>}]} {
    %c0_i32 = arith.constant 0 : i32
    %0 = arith.cmpi eq, %arg1, %c0_i32 : i32
    %1 = arith.extui %0 : i1 to i32
    %c0_i32_0 = arith.constant 0 : i32
    %2 = arith.cmpi ne, %1, %c0_i32_0 : i32
    scf.if %2 {
      %cst_24 = arith.constant 0.000000e+00 : f32
      %47 = vector.broadcast %cst_24 : f32 to vector<16x128xf32>
      %c0_25 = arith.constant 0 : index
      %c0_26 = arith.constant 0 : index
      %48 = vector.load %arg7[%c0_25, %c0_26] : memref<16x128xf32, #tpu.memory_space<vmem>>, vector<16x128xf32>
      tpu.vector_store %arg7[%c0_25, %c0_26], %47 {strides = array<i32>} : memref<16x128xf32, #tpu.memory_space<vmem>>, vector<16x128xf32>,
      %cst_27 = arith.constant 0xFF800000 : f32
      %49 = vector.broadcast %cst_27 : f32 to vector<16x128xf32>
      %c0_28 = arith.constant 0 : index
      %c0_29 = arith.constant 0 : index
      %50 = vector.load %arg8[%c0_28, %c0_29] : memref<16x128xf32, #tpu.memory_space<vmem>>, vector<16x128xf32>
      tpu.vector_store %arg8[%c0_28, %c0_29], %49 {strides = array<i32>} : memref<16x128xf32, #tpu.memory_space<vmem>>, vector<16x128xf32>,
    } else {
    }
    %c0 = arith.constant 0 : index
    %c0_1 = arith.constant 0 : index
    %c0_2 = arith.constant 0 : index
    %3 = vector.load %arg2[%c0, %c0_1, %c0_2] : memref<16x16x128xf32, #tpu.memory_space<vmem>>, vector<16x16x128xf32>
    %c0_3 = arith.constant 0 : index
    %c0_4 = arith.constant 0 : index
    %4 = vector.load %arg3[%c0_3, %c0_4] : memref<16x1xi32, #tpu.memory_space<vmem>>, vector<16x1xi32>
    %c16_i32 = arith.constant 16 : i32
    %5 = arith.muli %arg1, %c16_i32 : i32
    %6 = tpu.iota {dimensions = array<i32: 1>} : vector<16x16x1xi32>
    %7 = vector.broadcast %5 : i32 to vector<16x16x1xi32>
    %8 = arith.addi %7, %6 : vector<16x16x1xi32>
    %9 = vector.shape_cast %4 : vector<16x1xi32> to vector<16x1x1xi32>
    %10 = vector.broadcast %9 : vector<16x1x1xi32> to vector<16x16x1xi32>
    %11 = arith.cmpi slt, %8, %10 : vector<16x16x1xi32>
    %c0_5 = arith.constant 0 : index
    %c0_6 = arith.constant 0 : index
    %12 = vector.load %arg4[%c0_5, %c0_6] : memref<1x128xf32, #tpu.memory_space<vmem>>, vector<1x128xf32>
    %13 = vector.shape_cast %12 : vector<1x128xf32> to vector<1x1x128xf32>
    %14 = vector.broadcast %13 : vector<1x1x128xf32> to vector<16x16x128xf32>
    %15 = arith.mulf %3, %14 : vector<16x16x128xf32>
    %cst = arith.constant dense<0.000000e+00> : vector<16x16xf32>
    %16 = vector.multi_reduction <add>, %15, %cst [2] : vector<16x16x128xf32> to vector<16x16xf32>
    %17 = vector.shape_cast %16 : vector<16x16xf32> to vector<16x16x1xf32>
    %c0_7 = arith.constant 0 : index
    %c0_8 = arith.constant 0 : index
    %18 = memref.load %arg5[%c0_7, %c0_8] : memref<1x1xf32, #tpu.memory_space<smem>>
    %19 = vector.broadcast %18 : f32 to vector<16x16x1xf32>
    %20 = arith.addf %17, %19 : vector<16x16x1xf32>
    %21 = arith.negf %20 : vector<16x16x1xf32>
    %22 = math.exp %21 : vector<16x16x1xf32>
    %cst_9 = arith.constant 1.000000e+00 : f32
    %23 = vector.broadcast %cst_9 : f32 to vector<16x16x1xf32>
    %24 = arith.addf %23, %22 : vector<16x16x1xf32>
    %25 = arith.divf %23, %24 : vector<16x16x1xf32>
    %c0_10 = arith.constant 0 : index
    %c0_11 = arith.constant 0 : index
    %26 = vector.load %arg7[%c0_10, %c0_11] : memref<16x128xf32, #tpu.memory_space<vmem>>, vector<16x128xf32>
    %27 = vector.broadcast %25 : vector<16x16x1xf32> to vector<16x16x128xf32>
    %28 = arith.mulf %27, %3 : vector<16x16x128xf32>
    %cst_12 = arith.constant 0.000000e+00 : f32
    %29 = vector.shape_cast %11 : vector<16x16x1xi1> to vector<16x16x1xi1>
    %30 = vector.broadcast %29 : vector<16x16x1xi1> to vector<16x16x128xi1>
    %31 = vector.broadcast %cst_12 : f32 to vector<16x16x128xf32>
    %32 = arith.select %30, %28, %31 : vector<16x16x128xi1>, vector<16x16x128xf32>
    %cst_13 = arith.constant dense<0.000000e+00> : vector<16x128xf32>
    %33 = vector.multi_reduction <add>, %32, %cst_13 [1] : vector<16x16x128xf32> to vector<16x128xf32>
    %34 = arith.addf %26, %33 : vector<16x128xf32>
    %c0_14 = arith.constant 0 : index
    %c0_15 = arith.constant 0 : index
    %35 = vector.load %arg7[%c0_14, %c0_15] : memref<16x128xf32, #tpu.memory_space<vmem>>, vector<16x128xf32>
    tpu.vector_store %arg7[%c0_14, %c0_15], %34 {strides = array<i32>} : memref<16x128xf32, #tpu.memory_space<vmem>>, vector<16x128xf32>,
    %c0_16 = arith.constant 0 : index
    %c0_17 = arith.constant 0 : index
    %36 = vector.load %arg8[%c0_16, %c0_17] : memref<16x128xf32, #tpu.memory_space<vmem>>, vector<16x128xf32>
    %cst_18 = arith.constant 0xFF800000 : f32
    %37 = vector.shape_cast %11 : vector<16x16x1xi1> to vector<16x16x1xi1>
    %38 = vector.broadcast %37 : vector<16x16x1xi1> to vector<16x16x128xi1>
    %39 = vector.broadcast %cst_18 : f32 to vector<16x16x128xf32>
    %40 = arith.select %38, %3, %39 : vector<16x16x128xi1>, vector<16x16x128xf32>
    %cst_19 = arith.constant dense<0xFF800000> : vector<16x128xf32>
    %41 = vector.multi_reduction <maximumf>, %40, %cst_19 [1] : vector<16x16x128xf32> to vector<16x128xf32>
    %42 = arith.maximumf %36, %41 : vector<16x128xf32>
    %c0_20 = arith.constant 0 : index
    %c0_21 = arith.constant 0 : index
    %43 = vector.load %arg8[%c0_20, %c0_21] : memref<16x128xf32, #tpu.memory_space<vmem>>, vector<16x128xf32>
    tpu.vector_store %arg8[%c0_20, %c0_21], %42 {strides = array<i32>} : memref<16x128xf32, #tpu.memory_space<vmem>>, vector<16x128xf32>,
    %c0_i32_22 = arith.constant 0 : i32
    %44 = arith.cmpi eq, %arg1, %c0_i32_22 : i32
    %45 = arith.extui %44 : i1 to i32
    %c0_i32_23 = arith.constant 0 : i32
    %46 = arith.cmpi ne, %45, %c0_i32_23 : i32
    scf.if %46 {
      %c0_i32_24 = arith.constant 0 : i32
      %47 = vector.broadcast %c0_i32_24 : i32 to vector<16x1xi32>
      %48 = arith.cmpi sgt, %4, %47 : vector<16x1xi32>
      %c0_25 = arith.constant 0 : index
      %c0_26 = arith.constant 0 : index
      %49 = vector.load %arg8[%c0_25, %c0_26] : memref<16x128xf32, #tpu.memory_space<vmem>>, vector<16x128xf32>
      %cst_27 = arith.constant 0.000000e+00 : f32
      %50 = vector.shape_cast %48 : vector<16x1xi1> to vector<16x1xi1>
      %51 = vector.broadcast %50 : vector<16x1xi1> to vector<16x128xi1>
      %52 = vector.broadcast %cst_27 : f32 to vector<16x128xf32>
      %53 = arith.select %51, %49, %52 : vector<16x128xi1>, vector<16x128xf32>
      %c0_28 = arith.constant 0 : index
      %c0_29 = arith.constant 0 : index
      %54 = vector.load %arg7[%c0_28, %c0_29] : memref<16x128xf32, #tpu.memory_space<vmem>>, vector<16x128xf32>
      %c0_30 = arith.constant 0 : index
      %c0_31 = arith.constant 0 : index
      %c0_32 = arith.constant 0 : index
      %55 = vector.load %arg6[%c0_30, %c0_31, %c0_32] : memref<16x2x128xf32, #tpu.memory_space<vmem>>, vector<16x1x128xf32>
      %56 = vector.shape_cast %55 : vector<16x1x128xf32> to vector<16x128xf32>
      %57 = vector.shape_cast %54 : vector<16x128xf32> to vector<16x1x128xf32>
      tpu.vector_store %arg6[%c0_30, %c0_31, %c0_32], %57 {strides = array<i32>} : memref<16x2x128xf32, #tpu.memory_space<vmem>>, vector<16x1x128xf32>,
      %c0_33 = arith.constant 0 : index
      %c1 = arith.constant 1 : index
      %c0_34 = arith.constant 0 : index
      %58 = vector.load %arg6[%c0_33, %c1, %c0_34] : memref<16x2x128xf32, #tpu.memory_space<vmem>>, vector<16x1x128xf32>
      %59 = vector.shape_cast %58 : vector<16x1x128xf32> to vector<16x128xf32>
      %60 = vector.shape_cast %53 : vector<16x128xf32> to vector<16x1x128xf32>
      tpu.vector_store %arg6[%c0_33, %c1, %c0_34], %60 {strides = array<i32>} : memref<16x2x128xf32, #tpu.memory_space<vmem>>, vector<16x1x128xf32>,
    } else {
    }
    return
  }
  func.func @transform_0(%arg0: i32, %arg1: i32) -> (i32, i32, i32) {
    %c0_i32 = arith.constant 0 : i32
    %c0_i32_0 = arith.constant 0 : i32
    return %arg0, %arg1, %c0_i32 : i32, i32, i32
  }
  func.func @transform_1(%arg0: i32, %arg1: i32) -> (i32, i32) {
    %c0_i32 = arith.constant 0 : i32
    %c0_i32_0 = arith.constant 0 : i32
    return %arg0, %c0_i32 : i32, i32
  }
  func.func @transform_2(%arg0: i32, %arg1: i32) -> (i32, i32) {
    %c0_i32 = arith.constant 0 : i32
    %c0_i32_0 = arith.constant 0 : i32
    %c0_i32_1 = arith.constant 0 : i32
    return %c0_i32, %c0_i32_0 : i32, i32
  }
  func.func @transform_3(%arg0: i32, %arg1: i32) -> (i32, i32) {
    %c0_i32 = arith.constant 0 : i32
    %c0_i32_0 = arith.constant 0 : i32
    %c0_i32_1 = arith.constant 0 : i32
    return %c0_i32, %c0_i32_0 : i32, i32
  }
  func.func @transform_4(%arg0: i32, %arg1: i32) -> (i32, i32, i32) {
    %c0_i32 = arith.constant 0 : i32
    %c0_i32_0 = arith.constant 0 : i32
    %c0_i32_1 = arith.constant 0 : i32
    return %arg0, %c0_i32, %c0_i32_0 : i32, i32, i32
  }
}

</mosaic_0001>

<bundles_post_ra>
// kernel: tpu_custom_call.1
= control target key start
LH: loop header
LB: loop body
LE: loop exit
PB: predicated region body
PF: predicated region fallthrough
CT: control target
= control target key end

     0   :  { %10 = vsyncpa [#allocation6], 0  ;;  %s3291_s0 = inlined_call_operand.hbm [shape: f32[16,16,128], index: 0, kind: input, shape index: {}]   ;;  %s3292_s1 = inlined_call_operand.vmem [shape: s32[16,1], index: 1, kind: input, shape index: {}]   ;;  %s3293_s2 = inlined_call_operand.vmem [shape: f32[1,128], index: 2, kind: input, shape index: {}]   ;;  %s3294_s3 = inlined_call_operand.<no memory space> [shape: f32[1,1], index: 3, kind: input, shape index: {}]   ;;  %s3295_s4 = inlined_call_operand.hbm [shape: f32[16,2,128], index: 4, kind: output, shape index: {}]  }
   0x1   :  { %11 = vsyncpa [#allocation7], 0  ;;  %s16_s17 = sshll.u32 %s3291_s0, 4  ;;  %s1838_s18 = smov [#allocation5]   ;;  %s17_s17 = int_to_ptr.hbm [resolvable:$true] %s16_s17 }
   0x2   :  { %s18_s19 = sshll.u32 %s1838_s18, 4  ;;  %s1839_s20 = smov 128   ;;  %s19_s19 = int_to_ptr.vmem [resolvable:$true] %s18_s19 }
   0x3   :  { %s1840_s21 = smov 8  }
   0x4   :  { %24 = dma.hbm_to_vmem [thread:$0]  %s17_s17, 4096, %s19_s19, [#allocation6], %s1839_s20, %s1839_s20, %s1840_s21  }
   0x5   :  { %1834 = dma.done.wait [#allocation6], 4096  }
   0x6   :  { %1835 = vsyncadd [#allocation6], 4294963200  ;;  %v1873_v0 = vld [vmem:[#allocation5 + $0x20] sm:$0xff]  ;;  %v45_v2 = vld [vmem:[#allocation5 + $0x10] sm:$0xff]  ;;  %v1841_v46 = vmov 0   ;;  %s1570_s30 = sshll.u32 %s3295_s4, 4  ;;  %s1571_s30 = int_to_ptr.hbm [resolvable:$true] %s1570_s30 }
   0x7   :  { %v1878_v1 = vld [vmem:[%s3293_s2] ss:$0 sm:$0xff]  ;;  %v48_v7 = vld [vmem:[#allocation5 + $0x28] sm:$0xff]  ;;  %v1887_v8 = vld [vmem:[#allocation5 + $0x18] sm:$0xff]  ;;  %1622 = vset.pattern.permute.xlu2 %v1841_v46  ;;  %1623 = vset.pattern.permute.xlu0 %v1841_v46  ;;  %s1843_s5 = smov 32   ;;  %s1844_s6 = smov 2  }
   0x8   :  { %v1880_v3 = vld [vmem:[#allocation5] sm:$0xff]  ;;  %v154_v4 = vmul.f32 %v1878_v1, %v1873_v0  ;;  %v152_v5 = vmul.f32 %v1878_v1, %v45_v2  ;;  %v1889_v9 = vld [vmem:[#allocation5 + $0x8] sm:$0xff]  ;;  %v155_v10 = vmul.f32 %v1878_v1, %v48_v7  ;;  %v153_v11 = vmul.f32 %v1878_v1, %v1887_v8  ;;  %v50_v14 = vld [vmem:[#allocation5 + $0x38] sm:$0xff]  ;;  %1624 = vset.pattern.permute.xlu1 %v1841_v46 }
   0x9   :  { %v150_v6 = vmul.f32 %v1878_v1, %v1880_v3  ;;  %v151_v12 = vmul.f32 %v1878_v1, %v1889_v9  ;;  %v51_v13 = vld [vmem:[#allocation5 + $0x40] sm:$0xff]  ;;  %v1896_v15 = vld [vmem:[#allocation5 + $0x30] sm:$0xff]  ;;  %v157_v17 = vmul.f32 %v1878_v1, %v50_v14  ;;  %v54_v19 = vld [vmem:[#allocation5 + $0x58] sm:$0xff] }
   0xa   :  { %190 = vadd.xlane.f32.xlu2 %v154_v4  ;;  %186 = vadd.xlane.f32.xlu1 %v152_v5  ;;  %v158_v16 = vmul.f32 %v1878_v1, %v51_v13  ;;  %v156_v18 = vmul.f32 %v1878_v1, %v1896_v15  ;;  %v53_v20 = vld [vmem:[#allocation5 + $0x50] sm:$0xff]  ;;  %v52_v21 = vld [vmem:[#allocation5 + $0x48] sm:$0xff]  ;;  %v161_v22 = vmul.f32 %v1878_v1, %v54_v19  ;;  %v55_v27 = vld [vmem:[#allocation5 + $0x60] sm:$0xff]  ;;  %v78_v5 = vlaneseq }
   0xb   :  { %182 = vadd.xlane.f32.xlu0 %v150_v6  ;;  %v160_v23 = vmul.f32 %v1878_v1, %v53_v20  ;;  %v159_v24 = vmul.f32 %v1878_v1, %v52_v21  ;;  %v57_v25 = vld [vmem:[#allocation5 + $0x70] sm:$0xff]  ;;  %v56_v26 = vld [vmem:[#allocation5 + $0x68] sm:$0xff]  ;;  %v162_v30 = vmul.f32 %v1878_v1, %v55_v27  ;;  %v59_v32 = vld [vmem:[#allocation5 + $0x80] sm:$0xff] }
   0xc   :  { %v164_v28 = vmul.f32 %v1878_v1, %v57_v25  ;;  %v163_v29 = vmul.f32 %v1878_v1, %v56_v26  ;;  %v60_v31 = vld [vmem:[#allocation5 + $0x88] sm:$0xff]  ;;  %v58_v33 = vld [vmem:[#allocation5 + $0x78] sm:$0xff]  ;;  %v166_v35 = vmul.f32 %v1878_v1, %v59_v32  ;;  %v63_v37 = vld [vmem:[#allocation5 + $0xa0] sm:$0xff]  ;;  %v1933_v7 = vshrl.u32 %v78_v5, 7 }
   0xd   :  { %v167_v34 = vmul.f32 %v1878_v1, %v60_v31  ;;  %v165_v36 = vmul.f32 %v1878_v1, %v58_v33  ;;  %v62_v38 = vld [vmem:[#allocation5 + $0x98] sm:$0xff]  ;;  %v61_v39 = vld [vmem:[#allocation5 + $0x90] sm:$0xff]  ;;  %v170_v40 = vmul.f32 %v1878_v1, %v63_v37  ;;  %v64_v45 = vld [vmem:[#allocation5 + $0xa8] sm:$0xff] }
   0xe   :  { %v169_v41 = vmul.f32 %v1878_v1, %v62_v38  ;;  %v168_v42 = vmul.f32 %v1878_v1, %v61_v39  ;;  %v66_v43 = vld [vmem:[#allocation5 + $0xb8] sm:$0xff]  ;;  %v65_v44 = vld [vmem:[#allocation5 + $0xb0] sm:$0xff]  ;;  %v171_v49 = vmul.f32 %v1878_v1, %v64_v45  ;;  %v68_v51 = vld [vmem:[#allocation5 + $0xc8] sm:$0xff] }
   0xf   :  { %v173_v47 = vmul.f32 %v1878_v1, %v66_v43  ;;  %v172_v48 = vmul.f32 %v1878_v1, %v65_v44  ;;  %v69_v50 = vld [vmem:[#allocation5 + $0xd0] sm:$0xff]  ;;  %v67_v52 = vld [vmem:[#allocation5 + $0xc0] sm:$0xff]  ;;  %v175_v54 = vmul.f32 %v1878_v1, %v68_v51  ;;  %v72_v56 = vld [vmem:[#allocation5 + $0xe8] sm:$0xff] }
  0x10   :  { %v176_v53 = vmul.f32 %v1878_v1, %v69_v50  ;;  %v174_v55 = vmul.f32 %v1878_v1, %v67_v52  ;;  %v71_v57 = vld [vmem:[#allocation5 + $0xe0] sm:$0xff]  ;;  %v70_v58 = vld [vmem:[#allocation5 + $0xd8] sm:$0xff]  ;;  %v179_v59 = vmul.f32 %v1878_v1, %v72_v56  ;;  %v73_v63 = vld [vmem:[#allocation5 + $0xf0] sm:$0xff] }
  0x11   :  { %v178_v60 = vmul.f32 %v1878_v1, %v71_v57  ;;  %v177_v61 = vmul.f32 %v1878_v1, %v70_v58  ;;  %v74_v62 = vld [vmem:[#allocation5 + $0xf8] sm:$0xff]  ;;  %v180_v4 = vmul.f32 %v1878_v1, %v73_v63  ;;  %v1931_v6 = vld [vmem:[%s3292_s1] sm:$0xff] }
  0x12   :  { %192 = vadd.xlane.f32.xlu2 %v155_v10  ;;  %188 = vadd.xlane.f32.xlu1 %v153_v11  ;;  %v181_v2 = vmul.f32 %v1878_v1, %v74_v62  ;;  %v98_v10 = vperm.slane %v1931_v6, 0  ;;  %v84_v11 = vrot.slane %v1931_v6, 1  ;;  %v87_v14 = vrot.slane %v1931_v6, 4 }
  0x13   :  { %184 = vadd.xlane.f32.xlu0 %v151_v12  ;;  %v1939_v12 = vadd.s32 8, %v1933_v7 }
  0x14   :  { %vm114_vm0 = vcmp.lt.s32.totalorder %v1933_v7, %v98_v10  ;;  %v99_v13 = vperm.slane %v84_v11, 0 }
  0x15   :  { %v922_v1 = vsel %vm114_vm0, 1, %v1841_v46  ;;  %vm115_vm1 = vcmp.lt.s32.totalorder %v1939_v12, %v98_v10 }
  0x16   :  { %vm117_vm2 = vcmp.lt.s32.totalorder %v1939_v12, %v99_v13  ;;  %vm116_vm3 = vcmp.lt.s32.totalorder %v1933_v7, %v99_v13 }
  0x17   :  { %v925_v19 = vsel %vm117_vm2, 1, %v1841_v46  ;;  %v924_v20 = vsel %vm116_vm3, 1, %v1841_v46 }
  0x1a   :  { %198 = vadd.xlane.f32.xlu2 %v158_v16  ;;  %196 = vadd.xlane.f32.xlu1 %v157_v17  ;;  %v923_v16 = vsel %vm115_vm1, 1, %v1841_v46  ;;  %v85_v17 = vrot.slane %v1931_v6, 2 }
  0x1b   :  { %194 = vadd.xlane.f32.xlu0 %v156_v18  ;;  %v102_v18 = vperm.slane %v87_v14, 0 }
  0x1c   :  { %v100_v21 = vperm.slane %v85_v17, 0 }
  0x1d   :  { %vm122_vm4 = vcmp.lt.s32.totalorder %v1933_v7, %v102_v18  ;;  %vm123_vm11 = vcmp.lt.s32.totalorder %v1939_v12, %v102_v18 }
  0x1e   :  { %vm118_vm5 = vcmp.lt.s32.totalorder %v1933_v7, %v100_v21  ;;  %vm119_vm6 = vcmp.lt.s32.totalorder %v1939_v12, %v100_v21 }
  0x1f   :  { %v926_v26 = vsel %vm118_vm5, 1, %v1841_v46  ;;  %v927_v27 = vsel %vm119_vm6, 1, %v1841_v46 }
  0x22   :  { %204 = vadd.xlane.f32.xlu2 %v161_v22  ;;  %202 = vadd.xlane.f32.xlu1 %v160_v23  ;;  %v88_v22 = vrot.slane %v1931_v6, 5  ;;  %v930_v23 = vsel %vm122_vm4, 1, %v1841_v46 }
  0x23   :  { %200 = vadd.xlane.f32.xlu0 %v159_v24  ;;  %v86_v24 = vrot.slane %v1931_v6, 3 }
  0x24   :  { %v103_v25 = vperm.slane %v88_v22, 0 }
  0x26   :  { %vm125_vm7 = vcmp.lt.s32.totalorder %v1939_v12, %v103_v25  ;;  %vm124_vm12 = vcmp.lt.s32.totalorder %v1933_v7, %v103_v25 }
  0x2a   :  { %210 = vadd.xlane.f32.xlu2 %v164_v28  ;;  %208 = vadd.xlane.f32.xlu1 %v163_v29  ;;  %v101_v28 = vperm.slane %v86_v24, 0  ;;  %v90_v29 = vrot.slane %v1931_v6, 7 }
  0x2b   :  { %206 = vadd.xlane.f32.xlu0 %v162_v30  ;;  %v933_v30 = vsel %vm125_vm7, 1, %v1841_v46 }
  0x2c   :  { %vm120_vm8 = vcmp.lt.s32.totalorder %v1933_v7, %v101_v28  ;;  %v1962_v31 = vperm.slane %v90_v29, 0  ;;  %vm121_vm9 = vcmp.lt.s32.totalorder %v1939_v12, %v101_v28 }
  0x2d   :  { %v929_v39 = vsel %vm121_vm9, 1, %v1841_v46 }
  0x2e   :  { %vm128_vm10 = vcmp.lt.s32.totalorder %v1933_v7, %v1962_v31  ;;  %vm129_vm1 = vcmp.lt.s32.totalorder %v1939_v12, %v1962_v31 }
  0x2f   :  { %v936_v43 = vsel %vm128_vm10, 1, %v1841_v46 }
  0x32   :  { %216 = vadd.xlane.f32.xlu2 %v167_v34  ;;  %214 = vadd.xlane.f32.xlu1 %v166_v35  ;;  %v1968_v34 = vstv %s3294_s3 }
  0x33   :  { %212 = vadd.xlane.f32.xlu0 %v165_v36  ;;  %v928_v36 = vsel %vm120_vm8, 1, %v1841_v46 }
  0x3a   :  { %222 = vadd.xlane.f32.xlu2 %v170_v40  ;;  %220 = vadd.xlane.f32.xlu1 %v169_v41  ;;  %v1979_v40 = vld [vmem:[%s3292_s1 + $0x8] sm:$0xff]  ;;  %s1842_s1 = smov [#allocation8]  }
  0x3b   :  { %218 = vadd.xlane.f32.xlu0 %v168_v42  ;;  %v89_v42 = vrot.slane %v1931_v6, 6  ;;  %v106_v44 = vperm.slane %v1979_v40, 0  ;;  %v93_v56 = vrot.slane %v1979_v40, 3  ;;  %v95_v5 = vrot.slane %v1979_v40, 5  ;;  %s1568_s3 = sshll.u32 %s1842_s1, 4  ;;  %s1569_s3 = int_to_ptr.vmem [resolvable:$true] %s1568_s3 }
  0x3d   :  { %v104_v52 = vperm.slane %v89_v42, 0  ;;  %vm131_vm13 = vcmp.lt.s32.totalorder %v1939_v12, %v106_v44  ;;  %v2004_v11 = vperm.slane %v93_v56, 0  ;;  %vm2017_vm2 = vcmp.lt.s32.totalorder %v1933_v7, %v106_v44 }
  0x3f   :  { %vm126_vm14 = vcmp.lt.s32.totalorder %v1933_v7, %v104_v52  ;;  %vm127_vm15 = vcmp.lt.s32.totalorder %v1939_v12, %v104_v52  ;;  %vm137_vm3 = vcmp.lt.s32.totalorder %v1939_v12, %v2004_v11  ;;  %vm136_vm8 = vcmp.lt.s32.totalorder %v1933_v7, %v2004_v11 }
  0x40   :  { %v935_v21 = vsel %vm127_vm15, 1, %v1841_v46  ;;  %vm1454_vm15 = vcmp.gt.s32.totalorder %v1931_v6, 0 }
  0x42   :  { %228 = vadd.xlane.f32.xlu2 %v173_v47  ;;  %226 = vadd.xlane.f32.xlu1 %v172_v48 }
  0x43   :  { %224 = vadd.xlane.f32.xlu0 %v171_v49 }
  0x4a   :  { %234 = vadd.xlane.f32.xlu2 %v176_v53  ;;  %232 = vadd.xlane.f32.xlu1 %v175_v54  ;;  %v92_v53 = vrot.slane %v1979_v40, 2  ;;  %v931_v54 = vsel %vm123_vm11, 1, %v1841_v46 }
  0x4b   :  { %230 = vadd.xlane.f32.xlu0 %v174_v55  ;;  %v932_v55 = vsel %vm124_vm12, 1, %v1841_v46 }
  0x4c   :  { %v1997_v63 = vperm.slane %v92_v53, 0 }
  0x4e   :  { %vm134_vm0 = vcmp.lt.s32.totalorder %v1933_v7, %v1997_v63  ;;  %vm135_vm7 = vcmp.lt.s32.totalorder %v1939_v12, %v1997_v63 }
  0x52   :  { %240 = vadd.xlane.f32.xlu2 %v179_v59  ;;  %238 = vadd.xlane.f32.xlu1 %v178_v60  ;;  %v91_v59 = vrot.slane %v1979_v40, 1 }
  0x53   :  { %236 = vadd.xlane.f32.xlu0 %v177_v61 }
  0x5a   :  { %244 = vadd.xlane.f32.xlu1 %v181_v2 }
  0x5b   :  { %242 = vadd.xlane.f32.xlu0 %v180_v4  ;;  %v939_v4 = vsel %vm131_vm13, 1, %v1841_v46 }
  0x6a   :  { %955 = vperm.xlu2 %1622, %v922_v1   ;;  %v107_v1 = vperm.slane %v91_v59, 0 }
  0x6c   :  { %vm132_vm4 = vcmp.lt.s32.totalorder %v1933_v7, %v107_v1  ;;  %vm133_vm5 = vcmp.lt.s32.totalorder %v1939_v12, %v107_v1 }
  0x6f   :  { %958 = vperm.xlu0 %1623, %v923_v16   ;;  %v934_v16 = vsel %vm126_vm14, 1, %v1841_v46 }
  0x72   :  { %964 = vperm.xlu2 %1622, %v925_v19  }
  0x73   :  { %961 = vperm.xlu1 %1624, %v924_v20  }
  0x77   :  { %979 = vperm.xlu0 %1623, %v930_v23   ;;  %v2021_v23 = vperm.slane %v95_v5, 0 }
  0x79   :  { %vm140_vm6 = vcmp.lt.s32.totalorder %v1933_v7, %v2021_v23 }
  0x7a   :  { %967 = vperm.xlu2 %1622, %v926_v26   ;;  %v942_v26 = vsel %vm134_vm0, 1, %v1841_v46  ;;  %v2063_v52 = vsel %vm140_vm6, 1, %v1841_v46 }
  0x7b   :  { %970 = vperm.xlu1 %1624, %v927_v27  }
  0x7d   :  { %v191_v32 = vpop.xlane.xlu2 %190  ;;  %v187_v33 = vpop.xlane.xlu1 %186 }
  0x7e   :  { %v183_v35 = vpop.xlane.xlu0 %182  ;;  %v252_v38 = vadd.f32 %v1968_v34, %v191_v32  ;;  %v250_v47 = vadd.f32 %v1968_v34, %v187_v33  ;;  %v938_v32 = vsel %vm2017_vm2, 1, %v1841_v46  ;;  %v2039_v33 = vsel %vm137_vm3, 1, %v1841_v46 }
  0x7f   :  { %988 = vperm.xlu0 %1623, %v933_v30   ;;  %v248_v37 = vadd.f32 %v1968_v34, %v183_v35  ;;  %v937_v30 = vsel %vm129_vm1, 1, %v1841_v46  ;;  %v2042_v35 = vsel %vm132_vm4, 1, %v1841_v46  ;;  %vm141_vm3 = vcmp.lt.s32.totalorder %v1939_v12, %v2021_v23 }
  0x80   :  { %v1587_v45 = vmul.f32 -1.442695, %v252_v38  ;;  %v1585_v57 = vmul.f32 -1.442695, %v250_v47  ;;  %v2047_v38 = vsel %vm133_vm5, 1, %v1841_v46  ;;  %v94_v47 = vrot.slane %v1979_v40, 4 }
  0x81   :  { %v1583_v41 = vmul.f32 -1.442695, %v248_v37 }
  0x82   :  { %973 = vperm.xlu2 %1622, %v928_v36   ;;  %v110_v59 = vperm.slane %v94_v47, 0 }
  0x83   :  { %976 = vperm.xlu1 %1624, %v929_v39   ;;  %1626 = vpow2.f32 %v1583_v41  ;;  %v96_v39 = vrot.slane %v1979_v40, 6 }
  0x84   :  { %1628 = vpow2.f32 %v1587_v45  ;;  %vm138_vm11 = vcmp.lt.s32.totalorder %v1933_v7, %v110_v59  ;;  %vm139_vm14 = vcmp.lt.s32.totalorder %v1939_v12, %v110_v59 }
  0x85   :  { %v193_v48 = vpop.xlane.xlu2 %192  ;;  %v189_v49 = vpop.xlane.xlu1 %188  ;;  %1630 = vpow2.f32 %v1585_v57  ;;  %v2071_v56 = vperm.slane %v96_v39, 0  ;;  %v2125_v6 = vsel %vm138_vm11, 1, %v1841_v46 }
  0x86   :  { %v251_v50 = vadd.f32 %v1968_v34, %v189_v49  ;;  %v185_v51 = vpop.xlane.xlu0 %184  ;;  %v253_v61 = vadd.f32 %v1968_v34, %v193_v48 }
  0x87   :  { %997 = vperm.xlu0 %1623, %v936_v43   ;;  %v249_v58 = vadd.f32 %v1968_v34, %v185_v51  ;;  %vm143_vm10 = vcmp.lt.s32.totalorder %v1939_v12, %v2071_v56  ;;  %vm142_vm4 = vcmp.lt.s32.totalorder %v1933_v7, %v2071_v56 }
  0x88   :  { %v1586_v62 = vmul.f32 -1.442695, %v251_v50  ;;  %v1588_v18 = vmul.f32 -1.442695, %v253_v61 }
  0x89   :  { %v1627_v60 = vpop.eup %1626  ;;  %v1584_v10 = vmul.f32 -1.442695, %v249_v58 }
  0x8a   :  { %982 = vperm.xlu2 %1622, %v931_v54   ;;  %v1999_v2 = vadd.f32 1.0, %v1627_v60  ;;  %v1629_v17 = vpop.eup %1628 }
  0x8b   :  { %985 = vperm.xlu1 %1624, %v932_v55   ;;  %v2027_v25 = vadd.f32 1.0, %v1629_v17  ;;  %v1631_v27 = vpop.eup %1630 }
  0x8c   :  { %1632 = vrcp.f32 %v1999_v2  ;;  %v2053_v42 = vadd.f32 1.0, %v1631_v27  ;;  %v417_v60 = vand.u32 2147483647, %v1999_v2  ;;  %vm413_vm9 = vweird.f32 %v1999_v2 }
  0x8d   :  { %v199_v13 = vpop.xlane.xlu2 %198  ;;  %v197_v14 = vpop.xlane.xlu1 %196  ;;  %1634 = vpow2.f32 %v1586_v62  ;;  %v477_v53 = vand.u32 2147483647, %v2027_v25  ;;  %v2079_v62 = vsel %vm135_vm7, 1, %v1841_v46  ;;  %v479_v63 = vand.u32 2147483648, %v2027_v25 }
  0x8e   :  { %v256_v19 = vadd.f32 %v1968_v34, %v199_v13  ;;  %v195_v20 = vpop.xlane.xlu0 %194  ;;  %1636 = vpow2.f32 %v1584_v10  ;;  %v255_v29 = vadd.f32 %v1968_v34, %v197_v14  ;;  %v2090_v10 = vsel %vm136_vm8, 1, %v1841_v46 }
  0x8f   :  { %1006 = vperm.xlu0 %1623, %v939_v4   ;;  %v254_v24 = vadd.f32 %v1968_v34, %v195_v20  ;;  %1638 = vpow2.f32 %v1588_v18  ;;  %v419_v1 = vand.u32 2147483648, %v1999_v2  ;;  %vm2103_vm13 = vcmp.eq.f32.partialorder %v417_v60, 8.507059e+37 }
  0x90   :  { %v1591_v28 = vmul.f32 -1.442695, %v256_v19  ;;  %1640 = vrcp.f32 %v2027_v25  ;;  %v1590_v49 = vmul.f32 -1.442695, %v255_v29  ;;  %v2118_v27 = vsel %vm143_vm10, 1, %v1841_v46 }
  0x91   :  { %v1589_v37 = vmul.f32 -1.442695, %v254_v24  ;;  %vm473_vm1 = vweird.f32 %v2027_v25  ;;  %vm2190_vm6 = vcmp.eq.f32.partialorder %v477_v53, 8.507059e+37  ;;  %v2206_v19 = vsel %vm142_vm4, 1, %v1841_v46 }
  0x92   :  { %991 = vperm.xlu2 %1622, %v934_v16   ;;  %v2033_v31 = vpop.eup %1632  ;;  %1642 = vpow2.f32 %v1591_v28  ;;  %v420_v28 = vor.u32 1.1754944e-38, %v419_v1 }
  0x93   :  { %994 = vperm.xlu1 %1624, %v935_v21   ;;  %v1635_v36 = vpop.eup %1634  ;;  %v409_v41 = vmul.f32 %v2033_v31, %v1999_v2  ;;  %vm414_vm12 = vweird.f32 %v2033_v31 }
  0x94   :  { %v2055_v43 = vadd.f32 1.0, %v1635_v36  ;;  %v1637_v48 = vpop.eup %1636  ;;  %vm2144_vm0 = vmor %vm413_vm9, %vm414_vm12 }
  0x95   :  { %v205_v44 = vpop.xlane.xlu2 %204  ;;  %v203_v45 = vpop.xlane.xlu1 %202  ;;  %v410_v57 = vsub.f32 1.0, %v409_v41  ;;  %v2074_v58 = vadd.f32 1.0, %v1637_v48  ;;  %v2135_v41 = vsel %vm139_vm14, 1, %v1841_v46 }
  0x96   :  { %v259_v50 = vadd.f32 %v1968_v34, %v205_v44  ;;  %v201_v51 = vpop.xlane.xlu0 %200  ;;  %1644 = vrcp.f32 %v2055_v43  ;;  %v1639_v54 = vpop.eup %1638  ;;  %v258_v61 = vadd.f32 %v1968_v34, %v203_v45  ;;  %v2138_v44 = vsel %vm1454_vm15, 1, %v1841_v46 }
  0x97   :  { %1015 = vperm.xlu0 %1623, %v942_v26   ;;  %1646 = vpow2.f32 %v1589_v37  ;;  %v2082_v4 = vpop.eup %1640  ;;  %v2084_v5 = vadd.f32 1.0, %v1639_v54  ;;  %v257_v14 = vadd.f32 %v1968_v34, %v201_v51  ;;  %v411_v16 = vmul.f32 %v2033_v31, %v410_v57 }
  0x98   :  { %v1594_v55 = vmul.f32 -1.442695, %v259_v50  ;;  %1648 = vrcp.f32 %v2053_v42  ;;  %v1643_v13 = vpop.eup %1642  ;;  %v1593_v21 = vmul.f32 -1.442695, %v258_v61  ;;  %v469_v29 = vmul.f32 %v2082_v4, %v2027_v25 }
  0x99   :  { %1650 = vpow2.f32 %v1590_v49  ;;  %v412_v36 = vadd.f32 %v2033_v31, %v411_v16  ;;  %v2130_v37 = vadd.f32 1.0, %v1643_v13  ;;  %v462_v50 = vand.u32 2147483647, %v2055_v43 }
  0x9a   :  { %1000 = vperm.xlu2 %1622, %v937_v30   ;;  %1652 = vpow2.f32 %v1594_v55  ;;  %vm474_vm2 = vweird.f32 %v2082_v4  ;;  %v464_v55 = vand.u32 2147483648, %v2055_v43  ;;  %v470_v57 = vsub.f32 1.0, %v469_v29 }
  0x9b   :  { %1003 = vperm.xlu1 %1624, %v938_v32   ;;  %1654 = vrcp.f32 %v2074_v58  ;;  %v1592_v32 = vmul.f32 -1.442695, %v257_v14  ;;  %v416_v59 = vsel %vm2144_vm0, %v2033_v31, %v412_v36  ;;  %vm458_vm5 = vweird.f32 %v2055_v43  ;;  %vm2235_vm11 = vmor %vm473_vm1, %vm474_vm2 }
  0x9c   :  { %v2098_v17 = vpop.eup %1644  ;;  %1656 = vrcp.f32 %v2084_v5  ;;  %vm2212_vm7 = vcmp.eq.f32.partialorder %v462_v50, 8.507059e+37  ;;  %v465_v56 = vor.u32 1.1754944e-38, %v464_v55  ;;  %vm428_vm12 = vweird.f32 %v2074_v58 }
  0x9d   :  { %v211_v11 = vpop.xlane.xlu2 %210  ;;  %v209_v18 = vpop.xlane.xlu1 %208  ;;  %1658 = vpow2.f32 %v1593_v21  ;;  %v2183_v21 = vor.u32 1.1754944e-38, %v479_v63  ;;  %v2200_v63 = vsel %vm141_vm3, 1, %v1841_v46  ;;  %vm459_vm8 = vweird.f32 %v2098_v17 }
  0x9e   :  { %v1647_v20 = vpop.eup %1646  ;;  %v262_v22 = vadd.f32 %v1968_v34, %v211_v11  ;;  %v207_v24 = vpop.xlane.xlu0 %206  ;;  %v261_v49 = vadd.f32 %v1968_v34, %v209_v18  ;;  %1660 = vpow2.f32 %v1592_v32  ;;  %vm1455_vm0 = vcmp.gt.s32.totalorder %v1979_v40, 0 }
  0x9f   :  { %v2110_v26 = vpop.eup %1648  ;;  %1024 = vperm.xlu0 %1623, %v2039_v33   ;;  %v454_v33 = vmul.f32 %v2098_v17, %v2055_v43  ;;  %v2132_v39 = vadd.f32 1.0, %v1647_v20  ;;  %v260_v54 = vadd.f32 %v1968_v34, %v207_v24  ;;  %v421_v20 = vsel %vm2103_vm13, %v420_v28, %v416_v59  ;;  %vm2266_vm13 = vmor %vm458_vm5, %vm459_vm8 }
  0xa0   :  { %v1651_v30 = vpop.eup %1650  ;;  %v1597_v48 = vmul.f32 -1.442695, %v262_v22  ;;  %v1596_v14 = vmul.f32 -1.442695, %v261_v49  ;;  %v2210_v36 = vmul.f32 %v421_v20, %v1880_v3 }
  0xa1   :  { %v1653_v47 = vpop.eup %1652  ;;  %v2155_v2 = vadd.f32 1.0, %v1651_v30  ;;  %v455_v60 = vsub.f32 1.0, %v454_v33  ;;  %1662 = vrcp.f32 %v2132_v39  ;;  %v1595_v18 = vmul.f32 -1.442695, %v260_v54 }
  0xa2   :  { %1009 = vperm.xlu2 %1622, %v2042_v35   ;;  %v2153_v51 = vpop.eup %1654  ;;  %v97_v35 = vrot.slane %v1979_v40, 7  ;;  %v2167_v1 = vadd.f32 1.0, %v1653_v47  ;;  %1664 = vpow2.f32 %v1597_v48  ;;  %v471_v30 = vmul.f32 %v2082_v4, %v470_v57 }
  0xa3   :  { %1012 = vperm.xlu1 %1624, %v2047_v38   ;;  %v2164_v61 = vpop.eup %1656  ;;  %v424_v11 = vmul.f32 %v2153_v51, %v2074_v58  ;;  %1666 = vrcp.f32 %v2130_v37  ;;  %v456_v29 = vmul.f32 %v2098_v17, %v455_v60  ;;  %vm429_vm14 = vweird.f32 %v2153_v51 }
  0xa4   :  { %v1659_v22 = vpop.eup %1658  ;;  %1668 = vrcp.f32 %v2155_v2  ;;  %v113_v24 = vperm.slane %v97_v35, 0  ;;  %vm2296_vm15 = vmor %vm428_vm12, %vm429_vm14  ;;  %vm503_vm2 = vweird.f32 %v2132_v39 }
  0xa5   :  { %v217_v38 = vpop.xlane.xlu2 %216  ;;  %v215_v13 = vpop.xlane.xlu1 %214  ;;  %1670 = vrcp.f32 %v2167_v1  ;;  %v425_v23 = vsub.f32 1.0, %v424_v11  ;;  %v2218_v47 = vadd.f32 1.0, %v1659_v22  ;;  %v457_v3 = vadd.f32 %v2098_v17, %v456_v29 }
  0xa6   :  { %v265_v16 = vadd.f32 %v1968_v34, %v217_v38  ;;  %v213_v31 = vpop.xlane.xlu0 %212  ;;  %v1661_v53 = vpop.eup %1660  ;;  %1672 = vpow2.f32 %v1596_v14  ;;  %vm144_vm9 = vcmp.lt.s32.totalorder %v1933_v7, %v113_v24  ;;  %vm145_vm10 = vcmp.lt.s32.totalorder %v1939_v12, %v113_v24 }
  0xa7   :  { %1033 = vperm.xlu0 %1623, %v2063_v52   ;;  %v264_v52 = vadd.f32 %v1968_v34, %v215_v13  ;;  %v2216_v45 = vpop.eup %1662  ;;  %1674 = vpow2.f32 %v1595_v18  ;;  %v2228_v50 = vadd.f32 1.0, %v1661_v53  ;;  %v263_v57 = vadd.f32 %v1968_v34, %v213_v31 }
  0xa8   :  { %v1600_v28 = vmul.f32 -1.442695, %v265_v16  ;;  %v1665_v48 = vpop.eup %1664  ;;  %v426_v13 = vmul.f32 %v2153_v51, %v425_v23  ;;  %v499_v14 = vmul.f32 %v2216_v45, %v2132_v39  ;;  %v2255_v31 = vsel %vm144_vm9, 1, %v1841_v46 }
  0xa9   :  { %v2226_v49 = vpop.eup %1666  ;;  %v1599_v54 = vmul.f32 -1.442695, %v264_v52  ;;  %v2249_v25 = vadd.f32 1.0, %v1665_v48  ;;  %v2260_v11 = vsel %vm145_vm10, 1, %v1841_v46  ;;  %v461_v7 = vsel %vm2266_vm13, %v2098_v17, %v457_v3 }
  0xaa   :  { %1018 = vperm.xlu2 %1622, %v2079_v62   ;;  %v472_v62 = vadd.f32 %v2082_v4, %v471_v30  ;;  %v2240_v59 = vpop.eup %1668  ;;  %1676 = vpow2.f32 %v1600_v28  ;;  %v1598_v43 = vmul.f32 -1.442695, %v263_v57  ;;  %v432_v24 = vand.u32 2147483647, %v2074_v58 }
  0xab   :  { %1021 = vperm.xlu1 %1624, %v2090_v10   ;;  %v2246_v16 = vpop.eup %1670  ;;  %1678 = vrcp.f32 %v2218_v47  ;;  %v434_v29 = vand.u32 2147483648, %v2074_v58  ;;  %v427_v17 = vadd.f32 %v2153_v51, %v426_v13  ;;  %v500_v52 = vsub.f32 1.0, %v499_v14 }
  0xac   :  { %v1673_v20 = vpop.eup %1672  ;;  %v476_v12 = vsel %vm2235_vm11, %v2082_v4, %v472_v62  ;;  %1680 = vpow2.f32 %v1599_v54  ;;  %v466_v53 = vsel %vm2212_vm7, %v465_v56, %v461_v7  ;;  %vm2308_vm1 = vcmp.eq.f32.partialorder %v432_v24, 8.507059e+37 }
  0xad   :  { %v223_v10 = vpop.xlane.xlu2 %222  ;;  %v221_v35 = vpop.xlane.xlu1 %220  ;;  %1682 = vrcp.f32 %v2228_v50  ;;  %v2284_v4 = vadd.f32 1.0, %v1673_v20  ;;  %v481_v28 = vsel %vm2190_vm6, %v2183_v21, %v476_v12  ;;  %v435_v62 = vor.u32 1.1754944e-38, %v434_v29 }
  0xae   :  { %v268_v60 = vadd.f32 %v1968_v34, %v223_v10  ;;  %v219_v38 = vpop.xlane.xlu0 %218  ;;  %v1675_v22 = vpop.eup %1674  ;;  %1684 = vrcp.f32 %v2249_v25  ;;  %v431_v57 = vsel %vm2296_vm15, %v2153_v51, %v427_v17  ;;  %v501_v10 = vmul.f32 %v2216_v45, %v500_v52 }
  0xaf   :  { %1042 = vperm.xlu0 %1623, %v2118_v27   ;;  %v267_v27 = vadd.f32 %v1968_v34, %v221_v35  ;;  %v2300_v48 = vadd.f32 1.0, %v1675_v22  ;;  %1686 = vpow2.f32 %v1598_v43  ;;  %v266_v21 = vadd.f32 %v1968_v34, %v219_v38 }
  0xb0   :  { %v1603_v30 = vmul.f32 -1.442695, %v268_v60  ;;  %v1677_v23 = vpop.eup %1676  ;;  %vm504_vm3 = vweird.f32 %v2216_v45  ;;  %v507_v51 = vand.u32 2147483647, %v2132_v39  ;;  %v509_v18 = vand.u32 2147483648, %v2132_v39 }
  0xb1   :  { %v1602_v3 = vmul.f32 -1.442695, %v267_v27  ;;  %v2305_v33 = vpop.eup %1678  ;;  %v2316_v60 = vadd.f32 1.0, %v1677_v23  ;;  %v1601_v27 = vmul.f32 -1.442695, %v266_v21  ;;  %v2339_v22 = vmul.f32 %v481_v28, %v1873_v0  ;;  %vm2355_vm4 = vmor %vm503_vm2, %vm504_vm3 }
  0xb2   :  { %1027 = vperm.xlu2 %1622, %v2125_v6   ;;  %1688 = vpow2.f32 %v1603_v30  ;;  %v1681_v55 = vpop.eup %1680  ;;  %v502_v43 = vadd.f32 %v2216_v45, %v501_v10  ;;  %v436_v30 = vsel %vm2308_vm1, %v435_v62, %v431_v57  ;;  %vm2360_vm5 = vcmp.eq.f32.partialorder %v507_v51, 8.507059e+37 }
  0xb3   :  { %1030 = vperm.xlu1 %1624, %v2135_v41   ;;  %v439_v41 = vmul.f32 %v2110_v26, %v2053_v42  ;;  %v2322_v13 = vpop.eup %1682  ;;  %1690 = vpow2.f32 %v1602_v3  ;;  %v2335_v12 = vadd.f32 1.0, %v1681_v55  ;;  %vm444_vm6 = vweird.f32 %v2110_v26 }
  0xb4   :  { %v2327_v20 = vpop.eup %1684  ;;  %1692 = vrcp.f32 %v2284_v4  ;;  %v529_v39 = vmul.f32 %v2226_v49, %v2130_v37  ;;  %v449_v21 = vand.u32 2147483648, %v2053_v42  ;;  %vm443_vm7 = vweird.f32 %v2053_v42 }
  0xb5   :  { %v229_v32 = vpop.xlane.xlu2 %228  ;;  %v227_v58 = vpop.xlane.xlu1 %226  ;;  %v440_v35 = vsub.f32 1.0, %v439_v41  ;;  %1694 = vrcp.f32 %v2300_v48  ;;  %v506_v41 = vsel %vm2355_vm4, %v2216_v45, %v502_v43  ;;  %v447_v56 = vand.u32 2147483647, %v2053_v42  ;;  %vm2386_vm8 = vmor %vm443_vm7, %vm444_vm6 }
  0xb6   :  { %v225_v54 = vpop.xlane.xlu0 %224  ;;  %v271_v38 = vadd.f32 %v1968_v34, %v229_v32  ;;  %v270_v14 = vadd.f32 %v1968_v34, %v227_v58  ;;  %v1687_v24 = vpop.eup %1686  ;;  %1696 = vrcp.f32 %v2316_v60  ;;  %v544_v10 = vmul.f32 %v2322_v13, %v2228_v50 }
  0xb7   :  { %1461 = vperm.xlu0 %1623, %v2138_v44   ;;  %v2331_v44 = vmul.f32 %v466_v53, %v1887_v8  ;;  %v441_v7 = vmul.f32 %v2110_v26, %v440_v35  ;;  %v2347_v8 = vsel %vm1455_vm0, 1, %v1841_v46  ;;  %v510_v46 = vor.u32 1.1754944e-38, %v509_v18 }
  0xb8   :  { %v1606_v29 = vmul.f32 -1.442695, %v271_v38  ;;  %v1605_v17 = vmul.f32 -1.442695, %v270_v14  ;;  %1698 = vpow2.f32 %v1601_v27  ;;  %v2369_v23 = vadd.f32 1.0, %v1687_v24 }
  0xb9   :  { %v442_v28 = vadd.f32 %v2110_v26, %v441_v7  ;;  %1700 = vrcp.f32 %v2335_v12  ;;  %v511_v42 = vsel %vm2360_vm5, %v510_v46, %v506_v41  ;;  %v530_v14 = vsub.f32 1.0, %v529_v39  ;;  %v2425_v39 = vld [vmem:[#allocation5 + $0x10] sm:$0xff] }
  0xba   :  { %1036 = vperm.xlu2 %1622, %v2200_v63   ;;  %v1689_v63 = vpop.eup %1688  ;;  %1702 = vpow2.f32 %v1606_v29  ;;  %v2405_v18 = vmul.f32 %v436_v30, %v1889_v9  ;;  %v450_v27 = vor.u32 1.1754944e-38, %v449_v21  ;;  %vm448_vm9 = vcmp.eq.f32.partialorder %v447_v56, 8.507059e+37 }
  0xbb   :  { %1039 = vperm.xlu1 %1624, %v2206_v19   ;;  %v269_v19 = vadd.f32 %v1968_v34, %v225_v54  ;;  %v1691_v6 = vpop.eup %1690  ;;  %v2377_v58 = vadd.f32 1.0, %v1689_v63  ;;  %1704 = vpow2.f32 %v1605_v17  ;;  %v446_v38 = vsel %vm2386_vm8, %v2110_v26, %v442_v28 }
  0xbc   :  { %v2375_v32 = vpop.eup %1692  ;;  %v2394_v55 = vadd.f32 1.0, %v1691_v6  ;;  %1706 = vrcp.f32 %v2369_v23  ;;  %v545_v26 = vsub.f32 1.0, %v544_v10  ;;  %v2413_v0 = vmul.f32 %v511_v42, %v1896_v15 }
  0xbd   :  { %v235_v40 = vpop.xlane.xlu2 %234  ;;  %v233_v53 = vpop.xlane.xlu1 %232  ;;  %v1604_v54 = vmul.f32 -1.442695, %v269_v19  ;;  %1708 = vrcp.f32 %v2377_v58  ;;  %v531_v17 = vmul.f32 %v2226_v49, %v530_v14  ;;  %vm533_vm10 = vweird.f32 %v2130_v37 }
  0xbe   :  { %v231_v3 = vpop.xlane.xlu0 %230  ;;  %v2381_v62 = vpop.eup %1694  ;;  %v274_v57 = vadd.f32 %v1968_v34, %v235_v40  ;;  %3344 = vst [vmem:[#allocation11_spill] sm:$0xff] %v2394_v55  ;;  %v273_v51 = vadd.f32 %v1968_v34, %v233_v53  ;;  %vm534_vm11 = vweird.f32 %v2226_v49  ;;  %v537_v15 = vand.u32 2147483647, %v2130_v37 }
  0xbf   :  { %v2392_v35 = vpop.eup %1696  ;;  %v272_v43 = vadd.f32 %v1968_v34, %v231_v3  ;;  %1710 = vpow2.f32 %v1604_v54  ;;  %v484_v40 = vmul.f32 %v2164_v61, %v2084_v5  ;;  %v546_v3 = vmul.f32 %v2322_v13, %v545_v26  ;;  %vm2450_vm14 = vmor %vm533_vm10, %vm534_vm11 }
  0xc0   :  { %v1699_v7 = vpop.eup %1698  ;;  %v1609_v29 = vmul.f32 -1.442695, %v274_v57  ;;  %1712 = vrcp.f32 %v2394_v55  ;;  %v1608_v52 = vmul.f32 -1.442695, %v273_v51  ;;  %v539_v54 = vand.u32 2147483648, %v2130_v37 }
  0xc1   :  { %v2410_v24 = vpop.eup %1700  ;;  %v2419_v19 = vadd.f32 1.0, %v1699_v7  ;;  %v1607_v53 = vmul.f32 -1.442695, %v272_v43  ;;  %v532_v10 = vadd.f32 %v2226_v49, %v531_v17  ;;  %vm548_vm12 = vweird.f32 %v2228_v50 }
  0xc2   :  { %1045 = vperm.xlu2 %1622, %v2255_v31   ;;  %v451_v31 = vsel %vm448_vm9, %v450_v27, %v446_v38  ;;  %v1703_v9 = vpop.eup %1702  ;;  %1714 = vpow2.f32 %v1609_v29  ;;  %vm549_vm13 = vweird.f32 %v2322_v13  ;;  %v554_v51 = vand.u32 2147483648, %v2228_v50 }
  0xc3   :  { %1048 = vperm.xlu1 %1624, %v2260_v11   ;;  %v1705_v11 = vpop.eup %1704  ;;  %v2428_v6 = vmul.f32 %v2425_v39, %v451_v31  ;;  %v2433_v21 = vadd.f32 1.0, %v1703_v9  ;;  %1716 = vpow2.f32 %v1608_v52  ;;  %v485_v27 = vsub.f32 1.0, %v484_v40  ;;  %vm2464_vm15 = vmor %vm548_vm12, %vm549_vm13 }
  0xc4   :  { %v2431_v41 = vpop.eup %1706  ;;  %v2439_v45 = vadd.f32 1.0, %v1705_v11  ;;  %1718 = vpow2.f32 %v1607_v53  ;;  %v547_v26 = vadd.f32 %v2322_v13, %v546_v3  ;;  %v540_v31 = vor.u32 1.1754944e-38, %v539_v54 }
  0xc5   :  { %v241_v30 = vpop.xlane.xlu2 %240  ;;  %v239_v63 = vpop.xlane.xlu1 %238  ;;  %1720 = vrcp.f32 %v2419_v19  ;;  %v574_v9 = vmul.f32 %v2246_v16, %v2167_v1  ;;  %v536_v11 = vsel %vm2450_vm14, %v2226_v49, %v532_v10  ;;  %vm538_vm0 = vcmp.eq.f32.partialorder %v537_v15, 8.507059e+37 }
  0xc6   :  { %v237_v46 = vpop.xlane.xlu0 %236  ;;  %v277_v28 = vadd.f32 %v1968_v34, %v241_v30  ;;  %v276_v56 = vadd.f32 %v1968_v34, %v239_v63  ;;  %v2437_v57 = vpop.eup %1708  ;;  %3345 = vst [vmem:[#allocation12_spill] sm:$0xff] %v2439_v45  ;;  %1722 = vrcp.f32 %v2433_v21  ;;  %v555_v40 = vor.u32 1.1754944e-38, %v554_v51 }
  0xc7   :  { %v1711_v42 = vpop.eup %1710  ;;  %v275_v38 = vadd.f32 %v1968_v34, %v237_v46  ;;  %1724 = vrcp.f32 %v2439_v45  ;;  %v486_v3 = vmul.f32 %v2164_v61, %v485_v27  ;;  %v541_v49 = vsel %vm538_vm0, %v540_v31, %v536_v11 }
  0xc8   :  { %v2455_v7 = vpop.eup %1712  ;;  %v1612_v43 = vmul.f32 -1.442695, %v277_v28  ;;  %v1611_v29 = vmul.f32 -1.442695, %v276_v56  ;;  %v2471_v30 = vadd.f32 1.0, %v1711_v42  ;;  %v551_v28 = vsel %vm2464_vm15, %v2322_v13, %v547_v26 }
  0xc9   :  { %3348 = vst [vmem:[#allocation13_spill] sm:$0xff] %v2455_v7  ;;  %v1610_v52 = vmul.f32 -1.442695, %v275_v38  ;;  %vm488_vm2 = vweird.f32 %v2084_v5  ;;  %v575_v15 = vsub.f32 1.0, %v574_v9  ;;  %vm489_vm3 = vweird.f32 %v2164_v61 }
  0xca   :  { %1464 = vperm.xlu2 %1622, %v2347_v8   ;;  %v552_v8 = vand.u32 2147483647, %v2228_v50  ;;  %v1715_v50 = vpop.eup %1714  ;;  %1726 = vpow2.f32 %v1612_v43  ;;  %v487_v26 = vadd.f32 %v2164_v61, %v486_v3  ;;  %vm2506_vm4 = vmor %vm488_vm2, %vm489_vm3  ;;  %vm578_vm5 = vweird.f32 %v2167_v1 }
  0xcb   :  { %v1717_v56 = vpop.eup %1716  ;;  %1728 = vpow2.f32 %v1611_v29  ;;  %v2486_v10 = vadd.f32 1.0, %v1715_v50  ;;  %v576_v51 = vmul.f32 %v2246_v16, %v575_v15  ;;  %v494_v29 = vand.u32 2147483648, %v2084_v5  ;;  %v2515_v50 = vld [vmem:[#allocation5 + $0x40] sm:$0xff] }
  0xcc   :  { %vm553_vm1 = vcmp.eq.f32.partialorder %v552_v8, 8.507059e+37  ;;  %v1719_v54 = vpop.eup %1718  ;;  %1730 = vrcp.f32 %v2471_v30  ;;  %v2495_v43 = vadd.f32 1.0, %v1717_v56  ;;  %v492_v8 = vand.u32 2147483647, %v2084_v5  ;;  %v2527_v56 = vld [vmem:[#allocation5 + $0x48] sm:$0xff] }
  0xcd   :  { %v2473_v63 = vpop.permute.xlu2 %955  ;;  %v245_v17 = vpop.xlane.xlu1 %244  ;;  %3351 = vst [vmem:[#allocation14_spill] sm:$0xff] %v2486_v10  ;;  %1732 = vpow2.f32 %v1610_v52  ;;  %v556_v14 = vsel %vm553_vm1, %v555_v40, %v551_v28  ;;  %v2502_v37 = vadd.f32 1.0, %v1719_v54  ;;  %vm579_vm6 = vweird.f32 %v2246_v16 }
  0xce   :  { %v279_v46 = vadd.f32 %v1968_v34, %v245_v17  ;;  %v243_v53 = vpop.xlane.xlu0 %242  ;;  %v2489_v38 = vpop.eup %1720  ;;  %3352 = vst [vmem:[#allocation15_spill] sm:$0xff] %v2495_v43  ;;  %v589_v9 = vmul.f32 %v2381_v62, %v2300_v48  ;;  %vm1050_vm7 = vcmp.eq.s32.totalorder %v2473_v63, 1  ;;  %v2518_v5 = vmul.f32 %v2515_v50, %v541_v49  ;;  %vm2539_vm8 = vmor %vm578_vm5, %vm579_vm6 }
  0xcf   :  { %v278_v13 = vadd.f32 %v1968_v34, %v243_v53  ;;  %v2493_v27 = vpop.eup %1722  ;;  %v584_v52 = vand.u32 2147483648, %v2167_v1  ;;  %v577_v53 = vadd.f32 %v2246_v16, %v576_v51  ;;  %v582_v28 = vand.u32 2147483647, %v2167_v1 }
  0xd0   :  { %v1614_v42 = vmul.f32 -1.442695, %v279_v46  ;;  %v2500_v31 = vpop.eup %1724  ;;  %v2530_v15 = vmul.f32 %v2527_v56, %v556_v14  ;;  %v491_v49 = vsel %vm2506_vm4, %v2164_v61, %v487_v26  ;;  %v495_v54 = vor.u32 1.1754944e-38, %v494_v29 }
  0xd1   :  { %3353 = vst [vmem:[#allocation16_spill] sm:$0xff] %v2500_v31  ;;  %v1727_v17 = vpop.eup %1726  ;;  %v1613_v40 = vmul.f32 -1.442695, %v278_v13  ;;  %v1082_v14 = vsel %vm1050_vm7, %v2210_v36, 0.0  ;;  %vm493_vm9 = vcmp.eq.f32.partialorder %v492_v8, 8.507059e+37  ;;  %v590_v51 = vsub.f32 1.0, %v589_v9 }
  0xd2   :  { %1734 = vpow2.f32 %v1614_v42  ;;  %v1729_v46 = vpop.eup %1728  ;;  %v2547_v34 = vadd.f32 1.0, %v1727_v17  ;;  %v585_v26 = vor.u32 1.1754944e-38, %v584_v52  ;;  %v514_v1 = vmul.f32 %v2240_v59, %v2155_v2  ;;  %v1757_v17 = vld [vmem:[#allocation5] sm:$0xff] }
  0xd3   :  { %1736 = vrcp.f32 %v2486_v10  ;;  %v2524_v3 = vpop.eup %1730  ;;  %v2549_v61 = vadd.f32 1.0, %v1729_v46  ;;  %v581_v29 = vsel %vm2539_vm8, %v2246_v16, %v577_v53  ;;  %vm2556_vm10 = vcmp.eq.f32.partialorder %v582_v28, 8.507059e+37 }
  0xd4   :  { %1738 = vrcp.f32 %v2495_v43  ;;  %v1733_v13 = vpop.eup %1732  ;;  %3358 = vst [vmem:[#allocation17_spill] sm:$0xff] %v2547_v34  ;;  %v619_v36 = vmul.f32 %v2327_v20, %v2249_v25  ;;  %v1271_v52 = vsel %vm1050_vm7, %v1757_v17, -inf  ;;  %v496_v46 = vsel %vm493_vm9, %v495_v54, %v491_v49  ;;  %v1758_v43 = vld [vmem:[#allocation5 + $0x18] sm:$0xff] }
  0xd5   :  { %v965_v11 = vpop.permute.xlu2 %964  ;;  %1740 = vrcp.f32 %v2502_v37  ;;  %3359 = vst [vmem:[#allocation18_spill] sm:$0xff] %v2549_v61  ;;  %v2562_v9 = vadd.f32 1.0, %v1733_v13  ;;  %v591_v16 = vmul.f32 %v2381_v62, %v590_v51  ;;  %v597_v53 = vand.u32 2147483647, %v2300_v48 }
  0xd6   :  { %1742 = vpow2.f32 %v1613_v40  ;;  %v515_v40 = vsub.f32 1.0, %v514_v1  ;;  %vm1053_vm11 = vcmp.eq.s32.totalorder %v965_v11, 1  ;;  %v599_v28 = vand.u32 2147483648, %v2300_v48 }
  0xd7   :  { %3362 = vst [vmem:[#allocation19_spill] sm:$0xff] %v2562_v9  ;;  %1744 = vrcp.f32 %v2547_v34  ;;  %v586_v63 = vsel %vm2556_vm10, %v585_v26, %v581_v29  ;;  %vm593_vm12 = vweird.f32 %v2300_v48  ;;  %v620_v49 = vsub.f32 1.0, %v619_v36  ;;  %v2590_v29 = vld [vmem:[#allocation5 + $0x28] sm:$0xff] }
  0xd8   :  { %v1735_v8 = vpop.eup %1734  ;;  %1746 = vrcp.f32 %v2549_v61  ;;  %vm594_vm13 = vweird.f32 %v2381_v62  ;;  %v516_v1 = vmul.f32 %v2240_v59, %v515_v40  ;;  %v1085_v17 = vsel %vm1053_vm11, %v2331_v44, 0.0 }
  0xd9   :  { %v2566_v31 = vpop.eup %1736  ;;  %v2582_v51 = vadd.f32 1.0, %v1735_v8  ;;  %1748 = vrcp.f32 %v2562_v9  ;;  %v1274_v26 = vsel %vm1053_vm11, %v1758_v43, -inf  ;;  %v2593_v36 = vmul.f32 %v2590_v29, %v496_v46  ;;  %v2595_v8 = vld [vmem:[#allocation5 + $0x58] sm:$0xff]  ;;  %vm2609_vm15 = vmor %vm593_vm12, %vm594_vm13  ;;  %v1761_v9 = vld [vmem:[#allocation5 + $0x8] sm:$0xff] }
  0xda   :  { %3363 = vst [vmem:[#allocation20_spill] sm:$0xff] %v2566_v31  ;;  %v2571_v42 = vpop.eup %1738  ;;  %v592_v40 = vadd.f32 %v2381_v62, %v591_v16  ;;  %vm2601_vm14 = vcmp.eq.f32.partialorder %v597_v53, 8.507059e+37  ;;  %v600_v44 = vor.u32 1.1754944e-38, %v599_v28  ;;  %vm518_vm0 = vweird.f32 %v2155_v2 }
  0xdb   :  { %3364 = vst [vmem:[#allocation21_spill] sm:$0xff] %v2571_v42  ;;  %v2579_v54 = vpop.eup %1740  ;;  %v2598_v42 = vmul.f32 %v2595_v8, %v586_v63  ;;  %vm519_vm1 = vweird.f32 %v2240_v59  ;;  %v522_v16 = vand.u32 2147483647, %v2155_v2  ;;  %v621_v53 = vmul.f32 %v2327_v20, %v620_v49 }
  0xdc   :  { %3365 = vst [vmem:[#allocation22_spill] sm:$0xff] %v2579_v54  ;;  %v1743_v61 = vpop.eup %1742  ;;  %1750 = vrcp.f32 %v2582_v51  ;;  %v517_v28 = vadd.f32 %v2240_v59, %v516_v1  ;;  %v524_v63 = vand.u32 2147483648, %v2155_v2  ;;  %vm623_vm3 = vweird.f32 %v2249_v25  ;;  %vm2642_vm5 = vmor %vm518_vm0, %vm519_vm1 }
  0xdd   :  { %v2574_v13 = vpop.permute.xlu2 %967  ;;  %3366 = vst [vmem:[#allocation23_spill] sm:$0xff] %v2582_v51  ;;  %v2620_v48 = vpop.eup %1744  ;;  %v2622_v43 = vadd.f32 1.0, %v1743_v61  ;;  %vm624_vm4 = vweird.f32 %v2327_v20  ;;  %v634_v1 = vmul.f32 %v2431_v41, %v2369_v23  ;;  %vm2646_vm6 = vcmp.eq.f32.partialorder %v522_v16, 8.507059e+37 }
  0xde   :  { %3371 = vst [vmem:[#allocation24_spill] sm:$0xff] %v2620_v48  ;;  %v2626_v10 = vpop.eup %1746  ;;  %v521_v2 = vsel %vm2642_vm5, %v2240_v59, %v517_v28  ;;  %vm1054_vm8 = vcmp.eq.s32.totalorder %v2574_v13, 1  ;;  %vm2663_vm9 = vmor %vm623_vm3, %vm624_vm4  ;;  %vm1242_vm11 = vcmask 1041409   ;;  %v644_v13 = vand.u32 2147483648, %v2369_v23 }
  0xdf   :  { %3372 = vst [vmem:[#allocation25_spill] sm:$0xff] %v2626_v10  ;;  %v2634_v61 = vpop.eup %1748  ;;  %v635_v28 = vsub.f32 1.0, %v634_v1  ;;  %1752 = vrcp.f32 %v2622_v43  ;;  %vm638_vm0 = vweird.f32 %v2369_v23  ;;  %vm639_vm1 = vweird.f32 %v2431_v41 }
  0xe0   :  { %3373 = vst [vmem:[#allocation26_spill] sm:$0xff] %v2634_v61  ;;  %v525_v61 = vor.u32 1.1754944e-38, %v524_v63  ;;  %vm563_vm3 = vweird.f32 %v2218_v47  ;;  %vm1244_vm5 = vcmask 1042434  }
  0xe1   :  { %v959_v11 = vpop.permute.xlu0 %958 }
  0xe2   :  { %vm1051_vm2 = vcmp.eq.s32.totalorder %v959_v11, 1  ;;  %v596_v11 = vsel %vm2609_vm15, %v2381_v62, %v592_v40  ;;  %v629_v40 = vand.u32 2147483648, %v2249_v25 }
  0xe3   :  { %v1083_v45 = vsel %vm1051_vm2, %v2405_v18, 0.0  ;;  %v1272_v31 = vsel %vm1051_vm2, %v1761_v9, -inf  ;;  %v627_v9 = vand.u32 2147483647, %v2249_v25  ;;  %v559_v25 = vmul.f32 %v2305_v33, %v2218_v47  ;;  %vm2719_vm2 = vmor %vm638_vm0, %vm639_vm1 }
  0xe4   :  { %v1114_v49 = vadd.f32 %v1083_v45, %v1082_v14  ;;  %v622_v14 = vadd.f32 %v2327_v20, %v621_v53  ;;  %v1303_v10 = vmax.f32 %v1271_v52, %v1272_v31  ;;  %v2667_v31 = vpop.eup %1750  ;;  %v630_v63 = vor.u32 1.1754944e-38, %v629_v40 }
  0xe5   :  { %v2636_v51 = vpop.permute.xlu2 %973  ;;  %v962_v18 = vpop.permute.xlu1 %961  ;;  %vm2671_vm10 = vcmp.eq.f32.partialorder %v627_v9, 8.507059e+37  ;;  %v2688_v1 = vsel %vm2601_vm14, %v600_v44, %v596_v11  ;;  %vm668_vm1 = vweird.f32 %v2316_v60 }
  0xe6   :  { %v1115_v46 = vrot.slane %v1114_v49, 4  ;;  %vm1052_vm7 = vcmp.eq.s32.totalorder %v962_v18, 1  ;;  %v1304_v55 = vrot.slane %v1303_v10, 4  ;;  %vm1056_vm12 = vcmp.eq.s32.totalorder %v2636_v51, 1 }
  0xe7   :  { %v1084_v16 = vsel %vm1052_vm7, %v2428_v6, 0.0  ;;  %v1273_v48 = vsel %vm1052_vm7, %v2425_v39, -inf  ;;  %v526_v6 = vsel %vm2646_vm6, %v525_v61, %v521_v2  ;;  %vm564_vm6 = vweird.f32 %v2305_v33 }
  0xe8   :  { %v1116_v52 = vadd.f32 %v1115_v46, %v1114_v49  ;;  %v1121_v18 = vadd.f32 %v1085_v17, %v1084_v16  ;;  %v1310_v59 = vmax.f32 %v1273_v48, %v1274_v26  ;;  %v626_v17 = vsel %vm2663_vm9, %v2327_v20, %v622_v14  ;;  %v1762_v48 = vld [vmem:[#allocation5 + $0x20] sm:$0xff]  ;;  %v1763_v46 = vld [vmem:[#allocation5 + $0x38] sm:$0xff] }
  0xe9   :  { %v980_v45 = vpop.permute.xlu0 %979  ;;  %v1086_v26 = vsel %vm1054_vm8, %v2339_v22, 0.0  ;;  %v1275_v49 = vsel %vm1054_vm8, %v1762_v48, -inf  ;;  %v636_v20 = vmul.f32 %v2431_v41, %v635_v28  ;;  %v897_v2 = vmul.f32 %v1763_v46, %v526_v6 }
  0xea   :  { %v1117_v7 = vrot.slane %v1116_v52, 2  ;;  %v1122_v54 = vrot.slane %v1121_v18, 4  ;;  %v1311_v9 = vrot.slane %v1310_v59, 4  ;;  %v2693_v22 = vsel %vm2671_vm10, %v630_v63, %v626_v17  ;;  %vm2752_vm10 = vmor %vm563_vm3, %vm564_vm6 }
  0xeb   :  { %v560_v16 = vsub.f32 1.0, %v559_v25  ;;  %v1305_v53 = vmax.f32 %v1303_v10, %v1304_v55  ;;  %vm1058_vm13 = vcmp.eq.s32.totalorder %v980_v45, 1  ;;  %v637_v11 = vadd.f32 %v2431_v41, %v636_v20 }
  0xec   :  { %v1118_v61 = vadd.f32 %v1117_v7, %v1116_v52  ;;  %v1123_v62 = vadd.f32 %v1122_v54, %v1121_v18  ;;  %v1312_v44 = vmax.f32 %v1310_v59, %v1311_v9  ;;  %v2700_v52 = vpop.eup %1752  ;;  %v1090_v55 = vsel %vm1058_vm13, %v2518_v5, 0.0 }
  0xed   :  { %v983_v14 = vpop.permute.xlu2 %982  ;;  %v971_v40 = vpop.permute.xlu1 %970  ;;  %v642_v6 = vand.u32 2147483647, %v2369_v23  ;;  %v1279_v59 = vsel %vm1058_vm13, %v2515_v50, -inf  ;;  %v645_v48 = vor.u32 1.1754944e-38, %v644_v13 }
  0xee   :  { %v1124_v34 = vrot.slane %v1123_v62, 2  ;;  %vm1059_vm14 = vcmp.eq.s32.totalorder %v983_v14, 1  ;;  %vm1055_vm15 = vcmp.eq.s32.totalorder %v971_v40, 1  ;;  %v1119_v7 = vrot.slane %v1118_v61, 1 }
  0xef   :  { %v1091_v10 = vsel %vm1059_vm14, %v2530_v15, 0.0  ;;  %v1087_v18 = vsel %vm1055_vm15, %v2593_v36, 0.0  ;;  %v1280_v25 = vsel %vm1059_vm14, %v2527_v56, -inf  ;;  %v1306_v15 = vrot.slane %v1305_v53, 2 }
  0xf0   :  { %v1125_v54 = vadd.f32 %v1124_v34, %v1123_v62  ;;  %v1142_v63 = vadd.f32 %v1091_v10, %v1090_v55  ;;  %v1128_v36 = vadd.f32 %v1087_v18, %v1086_v26  ;;  %v1276_v17 = vsel %vm1055_vm15, %v2590_v29, -inf }
  0xf1   :  { %v2708_v28 = vpop.permute.xlu0 %988  ;;  %v1120_v50 = vadd.f32 %v1119_v7, %v1118_v61  ;;  %v1313_v62 = vrot.slane %v1312_v44, 2  ;;  %v561_v56 = vmul.f32 %v2305_v33, %v560_v16  ;;  %v1331_v9 = vmax.f32 %v1279_v59, %v1280_v25  ;;  %v1764_v7 = vld [vmem:[#allocation5 + $0x30] sm:$0xff] }
  0xf2   :  { %v1126_v39 = vrot.slane %v1125_v54, 1  ;;  %v1129_v20 = vrot.slane %v1128_v36, 4  ;;  %v641_v26 = vsel %vm2719_vm2, %v2431_v41, %v637_v11  ;;  %vm643_vm4 = vcmp.eq.f32.partialorder %v642_v6, 8.507059e+37 }
  0xf3   :  { %v1143_v40 = vrot.slane %v1142_v63, 4  ;;  %v1317_v13 = vmax.f32 %v1275_v49, %v1276_v17  ;;  %v2734_v61 = vmax.f32 %v1305_v53, %v1306_v15  ;;  %v1088_v16 = vsel %vm1056_vm12, %v2413_v0, 0.0 }
  0xf4   :  { %v1127_v45 = vadd.f32 %v1126_v39, %v1125_v54  ;;  %v1130_v34 = vadd.f32 %v1129_v20, %v1128_v36  ;;  %v1277_v41 = vsel %vm1056_vm12, %v1764_v7, -inf  ;;  %v2741_v54 = vmax.f32 %v1312_v44, %v1313_v62  ;;  %v1765_v36 = vld [vmem:[#allocation5 + $0x70] sm:$0xff]  ;;  %v1766_v44 = vld [vmem:[#allocation5 + $0x78] sm:$0xff] }
  0xf5   :  { %v2727_v23 = vpop.permute.xlu2 %991  ;;  %v977_v14 = vpop.permute.xlu1 %976  ;;  %v646_v11 = vsel %vm643_vm4, %v645_v48, %v641_v26  ;;  %v562_v55 = vadd.f32 %v2305_v33, %v561_v56  ;;  %v1332_v49 = vrot.slane %v1331_v9, 4  ;;  %v1144_v39 = vadd.f32 %v1143_v40, %v1142_v63 }
  0xf6   :  { %v1243_v29 = vsel %vm1242_vm11, %v1127_v45, %v1120_v50  ;;  %vm1057_vm7 = vcmp.eq.s32.totalorder %v977_v14, 1  ;;  %v1131_v10 = vrot.slane %v1130_v34, 2  ;;  %v1318_v59 = vrot.slane %v1317_v13, 4 }
  0xf7   :  { %v1089_v18 = vsel %vm1057_vm7, %v897_v2, 0.0  ;;  %v1278_v53 = vsel %vm1057_vm7, %v1763_v46, -inf  ;;  %v1308_v5 = vrot.slane %v2734_v61, 1  ;;  %v904_v51 = vmul.f32 %v1765_v36, %v2693_v22 }
  0xf8   :  { %v1135_v25 = vadd.f32 %v1089_v18, %v1088_v16  ;;  %v1324_v0 = vmax.f32 %v1277_v41, %v1278_v53  ;;  %v1132_v15 = vadd.f32 %v1131_v10, %v1130_v34  ;;  %v905_v17 = vmul.f32 %v1766_v44, %v646_v11 }
  0xf9   :  { %v998_v6 = vpop.permute.xlu0 %997  ;;  %v1315_v48 = vrot.slane %v2741_v54, 1  ;;  %vm1061_vm8 = vcmp.eq.s32.totalorder %v2708_v28, 1  ;;  %vm1246_vm12 = vcmask 1043459   ;;  %v566_v62 = vsel %vm2752_vm10, %v2305_v33, %v562_v55 }
  0xfa   :  { %v1136_v50 = vrot.slane %v1135_v25, 4  ;;  %vm1064_vm9 = vcmp.eq.s32.totalorder %v998_v6, 1  ;;  %v1133_v2 = vrot.slane %v1132_v15, 1  ;;  %v1282_v22 = vsel %vm1061_vm8, %v2595_v8, -inf }
  0xfb   :  { %v1325_v63 = vrot.slane %v1324_v0, 4  ;;  %v1145_v56 = vrot.slane %v1144_v39, 2  ;;  %v1333_v20 = vmax.f32 %v1331_v9, %v1332_v49  ;;  %v1319_v14 = vmax.f32 %v1317_v13, %v1318_v59 }
  0xfc   :  { %v1137_v26 = vadd.f32 %v1136_v50, %v1135_v25  ;;  %v1134_v40 = vadd.f32 %v1133_v2, %v1132_v15  ;;  %v1096_v16 = vsel %vm1064_vm9, %v904_v51, 0.0  ;;  %v567_v34 = vand.u32 2147483647, %v2218_v47  ;;  %v1767_v51 = vld [vmem:[#allocation5 + $0x50] sm:$0xff] }
  0xfd   :  { %v1001_v45 = vpop.permute.xlu2 %1000  ;;  %v986_v7 = vpop.permute.xlu1 %985  ;;  %v1285_v8 = vsel %vm1064_vm9, %v1765_v36, -inf  ;;  %v1326_v53 = vmax.f32 %v1324_v0, %v1325_v63  ;;  %v569_v9 = vand.u32 2147483648, %v2218_v47  ;;  %v664_v49 = vmul.f32 %v2392_v35, %v2316_v60 }
  0xfe   :  { %vm1065_vm13 = vcmp.eq.s32.totalorder %v1001_v45, 1  ;;  %v1138_v41 = vrot.slane %v1137_v26, 2  ;;  %v1245_v18 = vsel %vm1244_vm5, %v1134_v40, %v1243_v29  ;;  %vm1060_vm14 = vcmp.eq.s32.totalorder %v986_v7, 1 }
  0xff   :  { %v1097_v11 = vsel %vm1065_vm13, %v905_v17, 0.0  ;;  %v1286_v10 = vsel %vm1065_vm13, %v1766_v44, -inf  ;;  %v1334_v59 = vrot.slane %v1333_v20, 2  ;;  %v570_v15 = vor.u32 1.1754944e-38, %v569_v9 }
 0x100   :  { %v1163_v33 = vadd.f32 %v1097_v11, %v1096_v16  ;;  %v1139_v13 = vadd.f32 %v1138_v41, %v1137_v26  ;;  %v1352_v55 = vmax.f32 %v1285_v8, %v1286_v10  ;;  %v1281_v6 = vsel %vm1060_vm14, %v1767_v51, -inf }
 0x101   :  { %v1320_v36 = vrot.slane %v1319_v14, 2  ;;  %vm568_vm15 = vcmp.eq.f32.partialorder %v567_v34, 8.507059e+37  ;;  %v1338_v29 = vmax.f32 %v1281_v6, %v1282_v22  ;;  %v1327_v0 = vrot.slane %v1326_v53, 2 }
 0x102   :  { %v1164_v25 = vrot.slane %v1163_v33, 4  ;;  %v1140_v44 = vrot.slane %v1139_v13, 1  ;;  %v571_v50 = vsel %vm568_vm15, %v570_v15, %v566_v62  ;;  %v665_v47 = vsub.f32 1.0, %v664_v49 }
 0x103   :  { %v1353_v2 = vrot.slane %v1352_v55, 4  ;;  %v900_v63 = vmul.f32 %v1767_v51, %v571_v50  ;;  %v1339_v45 = vrot.slane %v1338_v29, 4  ;;  %v1146_v26 = vadd.f32 %v1145_v56, %v1144_v39 }
 0x104   :  { %v1165_v17 = vadd.f32 %v1164_v25, %v1163_v33  ;;  %v1141_v46 = vadd.f32 %v1140_v44, %v1139_v13  ;;  %v1335_v40 = vmax.f32 %v1333_v20, %v1334_v59  ;;  %v1093_v16 = vsel %vm1061_vm8, %v2598_v42, 0.0 }
 0x105   :  { %v1321_v8 = vmax.f32 %v1319_v14, %v1320_v36  ;;  %v1092_v22 = vsel %vm1060_vm14, %v900_v63, 0.0  ;;  %v1340_v34 = vmax.f32 %v1338_v29, %v1339_v45  ;;  %v1316_v62 = vmax.f32 %v2741_v54, %v1315_v48  ;;  %v1768_v54 = vld [vmem:[#allocation5 + $0x60] sm:$0xff]  ;;  %v995_v50 = vpop.permute.xlu1 %994 }
 0x106   :  { %v1166_v41 = vrot.slane %v1165_v17, 2  ;;  %v2774_v11 = vsel %vm1246_vm12, %v1141_v46, %v1245_v18  ;;  %v1328_v10 = vmax.f32 %v1326_v53, %v1327_v0  ;;  %v1149_v33 = vadd.f32 %v1093_v16, %v1092_v22  ;;  %v2787_v53 = vpop.permute.xlu0 %1006 }
 0x107   :  { %v666_v9 = vmul.f32 %v2392_v35, %v665_v47  ;;  %v1309_v39 = vmax.f32 %v2734_v61, %v1308_v5  ;;  %vm1062_vm0 = vcmp.eq.s32.totalorder %v2727_v23, 1  ;;  %v1354_v28 = vmax.f32 %v1352_v55, %v1353_v2 }
 0x108   :  { %v1167_v42 = vadd.f32 %v1166_v41, %v1165_v17  ;;  %v1147_v56 = vrot.slane %v1146_v26, 1  ;;  %v1336_v20 = vrot.slane %v1335_v40, 1  ;;  %vm669_vm2 = vweird.f32 %v2392_v35  ;;  %v2817_v17 = vpop.permute.xlu2 %1009 }
 0x109   :  { %v1322_v14 = vrot.slane %v1321_v8, 1  ;;  %v902_v48 = vmul.f32 %v1768_v54, %v2688_v1  ;;  %v1341_v7 = vrot.slane %v1340_v34, 2  ;;  %v674_v18 = vand.u32 2147483648, %v2316_v60  ;;  %vm2802_vm3 = vmor %vm668_vm1, %vm669_vm2 }
 0x10a   :  { %v2790_v61 = vsel %vm1242_vm11, %v1316_v62, %v1309_v39  ;;  %v1329_v5 = vrot.slane %v1328_v10, 1  ;;  %v667_v13 = vadd.f32 %v2392_v35, %v666_v9  ;;  %v672_v55 = vand.u32 2147483647, %v2316_v60  ;;  %v1770_v39 = vld [vmem:[#allocation5 + $0x68] sm:$0xff] }
 0x10b   :  { %v2796_v49 = vsel %vm1062_vm0, %v902_v48, 0.0  ;;  %v1168_v59 = vrot.slane %v1167_v42, 1  ;;  %v1355_v25 = vrot.slane %v1354_v28, 2  ;;  %v1150_v1 = vrot.slane %v1149_v33, 4 }
 0x10c   :  { %v2806_v51 = vadd.f32 %v1147_v56, %v1146_v26  ;;  %v2808_v6 = vmax.f32 %v1335_v40, %v1336_v20  ;;  %v1283_v36 = vsel %vm1062_vm0, %v1768_v54, -inf  ;;  %vm1067_vm4 = vcmp.eq.s32.totalorder %v2787_v53, 1  ;;  %v1769_v26 = vld [vmem:[#allocation5 + $0x88] sm:$0xff] }
 0x10d   :  { %v2813_v44 = vmax.f32 %v1321_v8, %v1322_v14  ;;  %v2815_v29 = vmax.f32 %v1340_v34, %v1341_v7  ;;  %v675_v0 = vor.u32 1.1754944e-38, %v674_v18  ;;  %v679_v60 = vmul.f32 %v2489_v38, %v2419_v19 }
 0x10e   :  { %v2821_v47 = vmax.f32 %v1328_v10, %v1329_v5  ;;  %v671_v23 = vsel %vm2802_vm3, %v2392_v35, %v667_v13  ;;  %vm673_vm6 = vcmp.eq.f32.partialorder %v672_v55, 8.507059e+37  ;;  %v604_v46 = vmul.f32 %v2375_v32, %v2284_v4  ;;  %v1016_v15 = vpop.permute.xlu0 %1015 }
 0x10f   :  { %v2828_v2 = vadd.f32 %v1168_v59, %v1167_v42  ;;  %v2830_v63 = vmax.f32 %v1354_v28, %v1355_v25  ;;  %v2832_v45 = vadd.f32 %v1150_v1, %v1149_v33  ;;  %v2836_v40 = vsel %vm1067_vm4, %v1769_v26, -inf }
 0x110   :  { %v687_v16 = vand.u32 2147483647, %v2419_v19  ;;  %v605_v41 = vsub.f32 1.0, %v604_v46  ;;  %vm1063_vm7 = vcmp.eq.s32.totalorder %v995_v50, 1  ;;  %v709_v35 = vmul.f32 %v2437_v57, %v2377_v58 }
 0x111   :  { %v1343_v8 = vrot.slane %v2815_v29, 1  ;;  %v676_v22 = vsel %vm673_vm6, %v675_v0, %v671_v23  ;;  %v680_v34 = vsub.f32 1.0, %v679_v60  ;;  %v614_v62 = vand.u32 2147483648, %v2284_v4  ;;  %v1019_v0 = vpop.permute.xlu2 %1018 }
 0x112   :  { %v689_v10 = vand.u32 2147483648, %v2419_v19  ;;  %v606_v33 = vmul.f32 %v2375_v32, %v605_v41  ;;  %vm609_vm8 = vweird.f32 %v2375_v32  ;;  %v612_v9 = vand.u32 2147483647, %v2284_v4 }
 0x113   :  { %v1284_v42 = vsel %vm1063_vm7, %v1770_v39, -inf  ;;  %v710_v28 = vsub.f32 1.0, %v709_v35  ;;  %vm713_vm9 = vweird.f32 %v2377_v58  ;;  %vm714_vm10 = vweird.f32 %v2437_v57 }
 0x114   :  { %v607_v56 = vadd.f32 %v2375_v32, %v606_v33  ;;  %vm608_vm13 = vweird.f32 %v2284_v4  ;;  %v717_v20 = vand.u32 2147483647, %v2377_v58  ;;  %v719_v14 = vand.u32 2147483648, %v2377_v58  ;;  %vm2862_vm0 = vmor %vm713_vm9, %vm714_vm10 }
 0x115   :  { %v1152_v54 = vrot.slane %v2832_v45, 2  ;;  %vm610_vm14 = vmor %vm608_vm13, %vm609_vm8  ;;  %v615_v48 = vor.u32 1.1754944e-38, %v614_v62  ;;  %v711_v7 = vmul.f32 %v2437_v57, %v710_v28  ;;  %v724_v18 = vmul.f32 %v2524_v3, %v2471_v30  ;;  %v1772_v28 = vld [vmem:[#allocation5 + $0xa0] sm:$0xff] }
 0x116   :  { %v681_v5 = vmul.f32 %v2489_v38, %v680_v34  ;;  %v611_v13 = vsel %vm610_vm14, %v2375_v32, %v607_v56  ;;  %vm613_vm15 = vcmp.eq.f32.partialorder %v612_v9, 8.507059e+37  ;;  %v1345_v55 = vmax.f32 %v1283_v36, %v1284_v42  ;;  %v1771_v42 = vld [vmem:[#allocation5 + $0xa8] sm:$0xff] }
 0x117   :  { %vm683_vm1 = vweird.f32 %v2419_v19  ;;  %vm684_vm2 = vweird.f32 %v2489_v38  ;;  %v616_v59 = vsel %vm613_vm15, %v615_v48, %v611_v13  ;;  %v712_v25 = vadd.f32 %v2437_v57, %v711_v7 }
 0x118   :  { %v720_v1 = vor.u32 1.1754944e-38, %v719_v14  ;;  %v725_v60 = vsub.f32 1.0, %v724_v18  ;;  %v903_v32 = vmul.f32 %v1770_v39, %v616_v59  ;;  %vm718_vm3 = vcmp.eq.f32.partialorder %v717_v20, 8.507059e+37  ;;  %v1004_v20 = vpop.permute.xlu1 %1003 }
 0x119   :  { %vm728_vm6 = vweird.f32 %v2471_v30  ;;  %vm729_vm8 = vweird.f32 %v2524_v3  ;;  %v716_v58 = vsel %vm2862_vm0, %v2437_v57, %v712_v25  ;;  %v732_v23 = vand.u32 2147483647, %v2471_v30 }
 0x11a   :  { %v726_v36 = vmul.f32 %v2524_v3, %v725_v60  ;;  %v734_v46 = vand.u32 2147483648, %v2471_v30  ;;  %v907_v41 = vmul.f32 %v1769_v26, %v676_v22  ;;  %v1095_v35 = vsel %vm1063_vm7, %v903_v32, 0.0  ;;  %vm2878_vm10 = vmor %vm728_vm6, %vm729_vm8 }
 0x11b   :  { %vm1070_vm9 = vcmp.eq.s32.totalorder %v1016_v15, 1  ;;  %vm1071_vm13 = vcmp.eq.s32.totalorder %v1019_v0, 1  ;;  %v1156_v62 = vadd.f32 %v1095_v35, %v2796_v49  ;;  %v721_v33 = vsel %vm718_vm3, %v720_v1, %v716_v58  ;;  %vm2911_vm6 = vmor %vm683_vm1, %vm684_vm2 }
 0x11c   :  { %v727_v57 = vadd.f32 %v2524_v3, %v726_v36  ;;  %vm733_vm14 = vcmp.eq.f32.partialorder %v732_v23, 8.507059e+37  ;;  %v690_v9 = vor.u32 1.1754944e-38, %v689_v10  ;;  %v735_v39 = vor.u32 1.1754944e-38, %v734_v46  ;;  %v1773_v46 = vld [vmem:[#allocation5 + $0x80] sm:$0xff] }
 0x11d   :  { %v1292_v30 = vsel %vm1071_vm13, %v1771_v42, -inf  ;;  %v649_v50 = vmul.f32 %v2410_v24, %v2335_v12  ;;  %v682_v26 = vadd.f32 %v2489_v38, %v681_v5  ;;  %v1346_v22 = vrot.slane %v1345_v55, 4 }
 0x11e   :  { %v1291_v56 = vsel %vm1070_vm9, %v1772_v28, -inf  ;;  %v731_v49 = vsel %vm2878_vm10, %v2524_v3, %v727_v57  ;;  %vm2894_vm7 = vcmp.eq.f32.partialorder %v687_v16, 8.507059e+37  ;;  %v1157_v14 = vrot.slane %v1156_v62, 4 }
 0x11f   :  { %v910_v48 = vmul.f32 %v1772_v28, %v721_v33  ;;  %v736_v7 = vsel %vm733_vm14, %v735_v39, %v731_v49  ;;  %v650_v18 = vsub.f32 1.0, %v649_v50  ;;  %v1373_v13 = vmax.f32 %v1291_v56, %v1292_v30 }
 0x120   :  { %v911_v5 = vmul.f32 %v1771_v42, %v736_v7  ;;  %vm654_vm15 = vweird.f32 %v2410_v24  ;;  %v657_v4 = vand.u32 2147483647, %v2335_v12  ;;  %v659_v3 = vand.u32 2147483648, %v2335_v12 }
 0x121   :  { %v651_v59 = vmul.f32 %v2410_v24, %v650_v18  ;;  %vm1066_vm0 = vcmp.eq.s32.totalorder %v1004_v20, 1  ;;  %v754_v16 = vmul.f32 %v2493_v27, %v2433_v21  ;;  %v1347_v25 = vmax.f32 %v1345_v55, %v1346_v22  ;;  %v2950_v18 = vpop.permute.xlu0 %1024  ;;  %v3406_v20 = vld [vmem:[#allocation20_spill] sm:$0xff] }
 0x122   :  { %v1102_v1 = vsel %vm1070_vm9, %v910_v48, 0.0  ;;  %v1103_v60 = vsel %vm1071_vm13, %v911_v5, 0.0  ;;  %vm653_vm3 = vweird.f32 %v2335_v12  ;;  %v1158_v58 = vadd.f32 %v1157_v14, %v1156_v62 }
 0x123   :  { %v1184_v36 = vadd.f32 %v1103_v60, %v1102_v1  ;;  %v652_v23 = vadd.f32 %v2410_v24, %v651_v59  ;;  %v1287_v55 = vsel %vm1066_vm0, %v1773_v46, -inf  ;;  %vm1068_vm8 = vcmp.eq.s32.totalorder %v2817_v17, 1  ;;  %vm655_vm9 = vmor %vm653_vm3, %vm654_vm15  ;;  %v1774_v59 = vld [vmem:[#allocation5 + $0x90] sm:$0xff] }
 0x124   :  { %v1374_v15 = vrot.slane %v1373_v13, 4  ;;  %v660_v12 = vor.u32 1.1754944e-38, %v659_v3  ;;  %v1359_v19 = vmax.f32 %v1287_v55, %v2836_v40  ;;  %v755_v0 = vsub.f32 1.0, %v754_v16 }
 0x125   :  { %v1153_v35 = vadd.f32 %v1152_v54, %v2832_v45  ;;  %v1185_v34 = vrot.slane %v1184_v36, 4  ;;  %v656_v62 = vsel %vm655_vm9, %v2410_v24, %v652_v23  ;;  %vm658_vm1 = vcmp.eq.f32.partialorder %v657_v4, 8.507059e+37 }
 0x126   :  { %v1099_v33 = vsel %vm1067_vm4, %v907_v41, 0.0  ;;  %v686_v57 = vsel %vm2911_vm6, %v2489_v38, %v682_v26  ;;  %v661_v39 = vsel %vm658_vm1, %v660_v12, %v656_v62  ;;  %v1360_v42 = vrot.slane %v1359_v19, 4  ;;  %v1013_v12 = vpop.permute.xlu1 %1012  ;;  %v3400_v62 = vld [vmem:[#allocation13_spill] sm:$0xff] }
 0x127   :  { %v1348_v30 = vrot.slane %v1347_v25, 2  ;;  %v1186_v40 = vadd.f32 %v1185_v34, %v1184_v36  ;;  %v906_v50 = vmul.f32 %v1773_v46, %v661_v39  ;;  %v756_v22 = vmul.f32 %v2493_v27, %v755_v0  ;;  %v3399_v34 = vld [vmem:[#allocation11_spill] sm:$0xff] }
 0x128   :  { %v1159_v28 = vrot.slane %v1158_v58, 2  ;;  %v1375_v45 = vmax.f32 %v1373_v13, %v1374_v15  ;;  %vm758_vm2 = vweird.f32 %v2433_v21  ;;  %vm759_vm10 = vweird.f32 %v2493_v27 }
 0x129   :  { %v1187_v24 = vrot.slane %v1186_v40, 2  ;;  %v1098_v53 = vsel %vm1066_vm0, %v906_v50, 0.0  ;;  %v1361_v54 = vmax.f32 %v1359_v19, %v1360_v42  ;;  %v764_v41 = vand.u32 2147483648, %v2433_v21  ;;  %vm2946_vm4 = vmor %vm758_vm2, %vm759_vm10 }
 0x12a   :  { %v691_v38 = vsel %vm2894_vm7, %v690_v9, %v686_v57  ;;  %v1170_v26 = vadd.f32 %v1099_v33, %v1098_v53  ;;  %v757_v56 = vadd.f32 %v2493_v27, %v756_v22  ;;  %v762_v49 = vand.u32 2147483647, %v2433_v21  ;;  %v3398_v9 = vld [vmem:[#allocation22_spill] sm:$0xff] }
 0x12b   :  { %v1154_v14 = vrot.slane %v1153_v35, 1  ;;  %v2942_v48 = vmax.f32 %v2815_v29, %v1343_v8  ;;  %v2944_v7 = vmax.f32 %v1347_v25, %v1348_v30  ;;  %v769_v10 = vmul.f32 %v3398_v9, %v2502_v37 }
 0x12c   :  { %v2954_v5 = vadd.f32 %v1159_v28, %v1158_v58  ;;  %v1188_v21 = vadd.f32 %v1187_v24, %v1186_v40  ;;  %v1376_v13 = vrot.slane %v1375_v45, 2  ;;  %v1171_v4 = vrot.slane %v1170_v26, 4 }
 0x12d   :  { %v908_v3 = vmul.f32 %v1774_v59, %v691_v38  ;;  %v1362_v29 = vrot.slane %v1361_v54, 2  ;;  %v765_v8 = vor.u32 1.1754944e-38, %v764_v41  ;;  %v770_v16 = vsub.f32 1.0, %v769_v10 }
 0x12e   :  { %v1172_v25 = vadd.f32 %v1171_v4, %v1170_v26  ;;  %v761_v1 = vsel %vm2946_vm4, %v2493_v27, %v757_v56  ;;  %vm763_vm13 = vcmp.eq.f32.partialorder %v762_v49, 8.507059e+37  ;;  %vm1073_vm14 = vcmp.eq.s32.totalorder %v2950_v18, 1  ;;  %v2972_v27 = vpop.permute.xlu2 %1027 }
 0x12f   :  { %v2960_v60 = vadd.f32 %v1154_v14, %v1153_v35  ;;  %v2964_v32 = vsel %vm1068_vm8, %v908_v3, 0.0  ;;  %v1289_v58 = vsel %vm1068_vm8, %v1774_v59, -inf  ;;  %v1350_v36 = vrot.slane %v2944_v7, 1  ;;  %v1775_v35 = vld [vmem:[#allocation5 + $0xb8] sm:$0xff]  ;;  %v3407_v3 = vld [vmem:[#allocation19_spill] sm:$0xff] }
 0x130   :  { %v1161_v23 = vrot.slane %v2954_v5, 1  ;;  %v1189_v46 = vrot.slane %v1188_v21, 1  ;;  %v2970_v55 = vmax.f32 %v1375_v45, %v1376_v13  ;;  %v771_v15 = vmul.f32 %v3398_v9, %v770_v16  ;;  %v1776_v45 = vld [vmem:[#allocation5 + $0x98] sm:$0xff] }
 0x131   :  { %v2975_v19 = vmax.f32 %v1361_v54, %v1362_v29  ;;  %v766_v0 = vsel %vm763_vm13, %v765_v8, %v761_v1  ;;  %v2979_v17 = vsel %vm1073_vm14, %v1775_v35, -inf  ;;  %v694_v33 = vmul.f32 %v3400_v62, %v3399_v34  ;;  %v3405_v14 = vld [vmem:[#allocation14_spill] sm:$0xff] }
 0x132   :  { %v1173_v57 = vrot.slane %v1172_v25, 2  ;;  %vm773_vm7 = vweird.f32 %v2502_v37  ;;  %v777_v39 = vand.u32 2147483647, %v2502_v37  ;;  %v779_v42 = vand.u32 2147483648, %v2502_v37  ;;  %v3408_v29 = vld [vmem:[#allocation26_spill] sm:$0xff] }
 0x133   :  { %vm774_vm15 = vweird.f32 %v3398_v9  ;;  %v695_v30 = vsub.f32 1.0, %v694_v33  ;;  %v704_v40 = vand.u32 2147483648, %v3399_v34  ;;  %vm1069_vm0 = vcmp.eq.s32.totalorder %v1013_v12, 1 }
 0x134   :  { %v2988_v50 = vadd.f32 %v1189_v46, %v1188_v21  ;;  %v913_v22 = vmul.f32 %v1775_v35, %v766_v0  ;;  %v772_v28 = vadd.f32 %v3398_v9, %v771_v15  ;;  %v1290_v24 = vsel %vm1069_vm0, %v1776_v45, -inf  ;;  %vm2999_vm6 = vmor %vm773_vm7, %vm774_vm15  ;;  %v1034_v0 = vpop.permute.xlu0 %1033 }
 0x135   :  { %v696_v53 = vmul.f32 %v3400_v62, %v695_v30  ;;  %vm699_vm3 = vweird.f32 %v3400_v62  ;;  %v702_v54 = vand.u32 2147483647, %v3399_v34  ;;  %v1366_v41 = vmax.f32 %v1289_v58, %v1290_v24  ;;  %v3416_v24 = vld [vmem:[#allocation16_spill] sm:$0xff] }
 0x136   :  { %v2995_v38 = vadd.f32 %v1173_v57, %v1172_v25  ;;  %vm3003_vm8 = vcmp.eq.f32.partialorder %v777_v39, 8.507059e+37  ;;  %v780_v49 = vor.u32 1.1754944e-38, %v779_v42  ;;  %vm698_vm9 = vweird.f32 %v3399_v34  ;;  %v1037_v35 = vpop.permute.xlu2 %1036 }
 0x137   :  { %v799_v10 = vmul.f32 %v3406_v20, %v3405_v14  ;;  %v697_v21 = vadd.f32 %v3400_v62, %v696_v53  ;;  %v705_v13 = vor.u32 1.1754944e-38, %v704_v40  ;;  %vm803_vm1 = vweird.f32 %v3405_v14  ;;  %vm700_vm2 = vmor %vm698_vm9, %vm699_vm3 }
 0x138   :  { %v807_v37 = vand.u32 2147483647, %v3405_v14  ;;  %vm804_vm10 = vweird.f32 %v3406_v20  ;;  %v809_v59 = vand.u32 2147483648, %v3405_v14  ;;  %v814_v8 = vmul.f32 %v3408_v29, %v3407_v3 }
 0x139   :  { %v800_v4 = vsub.f32 1.0, %v799_v10  ;;  %v776_v16 = vsel %vm2999_vm6, %v3398_v9, %v772_v28  ;;  %v701_v25 = vsel %vm700_vm2, %v3400_v62, %v697_v21  ;;  %vm703_vm4 = vcmp.eq.f32.partialorder %v702_v54, 8.507059e+37  ;;  %vm3028_vm7 = vmor %vm803_vm1, %vm804_vm10 }
 0x13a   :  { %v1367_v1 = vrot.slane %v1366_v41, 4  ;;  %v706_v58 = vsel %vm703_vm4, %v705_v13, %v701_v25  ;;  %vm3022_vm13 = vcmp.eq.f32.partialorder %v807_v37, 8.507059e+37  ;;  %v815_v34 = vsub.f32 1.0, %v814_v8  ;;  %v1777_v13 = vld [vmem:[#allocation5 + $0xd8] sm:$0xff] }
 0x13b   :  { %v801_v46 = vmul.f32 %v3406_v20, %v800_v4  ;;  %v909_v33 = vmul.f32 %v1776_v45, %v706_v58  ;;  %v810_v9 = vor.u32 1.1754944e-38, %v809_v59  ;;  %vm818_vm15 = vweird.f32 %v3407_v3  ;;  %v3415_v45 = vld [vmem:[#allocation12_spill] sm:$0xff] }
 0x13c   :  { %vm819_vm3 = vweird.f32 %v3408_v29  ;;  %v816_v39 = vmul.f32 %v3408_v29, %v815_v34  ;;  %v822_v42 = vand.u32 2147483647, %v3407_v3  ;;  %v824_v30 = vand.u32 2147483648, %v3407_v3  ;;  %v1778_v3 = vld [vmem:[#allocation5 + $0xd0] sm:$0xff] }
 0x13d   :  { %v802_v62 = vadd.f32 %v3406_v20, %v801_v46  ;;  %v1101_v40 = vsel %vm1069_vm0, %v909_v33, 0.0  ;;  %vm1076_vm6 = vcmp.eq.s32.totalorder %v1034_v0, 1  ;;  %vm3039_vm9 = vmor %vm818_vm15, %vm819_vm3  ;;  %vm1077_vm1 = vcmp.eq.s32.totalorder %v1037_v35, 1  ;;  %v1022_v33 = vpop.permute.xlu1 %1021 }
 0x13e   :  { %v739_v53 = vmul.f32 %v3416_v24, %v3415_v45  ;;  %v1177_v54 = vadd.f32 %v1101_v40, %v2964_v32  ;;  %v817_v14 = vadd.f32 %v3408_v29, %v816_v39  ;;  %vm823_vm2 = vcmp.eq.f32.partialorder %v822_v42, 8.507059e+37  ;;  %v1779_v40 = vld [vmem:[#allocation5 + $0xb0] sm:$0xff] }
 0x13f   :  { %v806_v26 = vsel %vm3028_vm7, %v3406_v20, %v802_v62  ;;  %v1368_v12 = vmax.f32 %v1366_v41, %v1367_v1  ;;  %v825_v21 = vor.u32 1.1754944e-38, %v824_v30  ;;  %v1298_v37 = vsel %vm1077_vm1, %v1777_v13, -inf }
 0x140   :  { %v811_v10 = vsel %vm3022_vm13, %v810_v9, %v806_v26  ;;  %v1175_v4 = vrot.slane %v2995_v38, 1  ;;  %v1105_v32 = vsel %vm1073_vm14, %v913_v22, 0.0  ;;  %v1178_v59 = vrot.slane %v1177_v54, 4 }
 0x141   :  { %v821_v20 = vsel %vm3039_vm9, %v3408_v29, %v817_v14  ;;  %v781_v41 = vsel %vm3003_vm8, %v780_v49, %v776_v16  ;;  %v1297_v8 = vsel %vm1076_vm6, %v1778_v3, -inf  ;;  %v740_v1 = vsub.f32 1.0, %v739_v53 }
 0x142   :  { %v826_v25 = vsel %vm823_vm2, %v825_v21, %v821_v20  ;;  %v1179_v58 = vadd.f32 %v1178_v59, %v1177_v54  ;;  %v916_v46 = vmul.f32 %v1778_v3, %v811_v10  ;;  %v1394_v34 = vmax.f32 %v1297_v8, %v1298_v37  ;;  %v3417_v10 = vld [vmem:[#allocation17_spill] sm:$0xff] }
 0x143   :  { %v917_v15 = vmul.f32 %v1777_v13, %v826_v25  ;;  %v1369_v18 = vrot.slane %v1368_v12, 2  ;;  %v741_v22 = vmul.f32 %v3416_v24, %v740_v1  ;;  %vm744_vm14 = vweird.f32 %v3416_v24 }
 0x144   :  { %v747_v29 = vand.u32 2147483647, %v3415_v45  ;;  %v1180_v57 = vrot.slane %v1179_v58, 2  ;;  %v1108_v56 = vsel %vm1076_vm6, %v916_v46, 0.0  ;;  %v749_v16 = vand.u32 2147483648, %v3415_v45 }
 0x145   :  { %v1109_v49 = vsel %vm1077_vm1, %v917_v15, 0.0  ;;  %v742_v62 = vadd.f32 %v3416_v24, %v741_v22  ;;  %vm743_vm0 = vweird.f32 %v3415_v45  ;;  %vm1072_vm8 = vcmp.eq.s32.totalorder %v1022_v33, 1  ;;  %v3418_v45 = vld [vmem:[#allocation24_spill] sm:$0xff]  ;;  %v1780_v33 = vld [vmem:[#allocation5 + $0xc0] sm:$0xff] }
 0x146   :  { %v1205_v9 = vadd.f32 %v1109_v49, %v1108_v56  ;;  %v1181_v39 = vadd.f32 %v1180_v57, %v1179_v58  ;;  %v1395_v42 = vrot.slane %v1394_v34, 4  ;;  %vm745_vm10 = vmor %vm743_vm0, %vm744_vm14  ;;  %v750_v30 = vor.u32 1.1754944e-38, %v749_v16  ;;  %v3092_v56 = vpop.permute.xlu0 %1042 }
 0x147   :  { %v1293_v28 = vsel %vm1072_vm8, %v1779_v40, -inf  ;;  %v746_v0 = vsel %vm745_vm10, %v3416_v24, %v742_v62  ;;  %vm748_vm4 = vcmp.eq.f32.partialorder %v747_v29, 8.507059e+37  ;;  %v1176_v54 = vadd.f32 %v1175_v4, %v2995_v38 }
 0x148   :  { %v1206_v53 = vrot.slane %v1205_v9, 4  ;;  %v1380_v35 = vmax.f32 %v1293_v28, %v2979_v17  ;;  %v1182_v26 = vrot.slane %v1181_v39, 1  ;;  %v751_v14 = vsel %vm748_vm4, %v750_v30, %v746_v0 }
 0x149   :  { %v844_v21 = vmul.f32 %v3418_v45, %v3417_v10  ;;  %v1370_v13 = vmax.f32 %v1368_v12, %v1369_v18  ;;  %v912_v59 = vmul.f32 %v1779_v40, %v751_v14  ;;  %vm848_vm13 = vweird.f32 %v3417_v10 }
 0x14a   :  { %v1207_v37 = vadd.f32 %v1206_v53, %v1205_v9  ;;  %v1381_v20 = vrot.slane %v1380_v35, 4  ;;  %v1183_v3 = vadd.f32 %v1182_v26, %v1181_v39  ;;  %vm849_vm7 = vweird.f32 %v3418_v45 }
 0x14b   :  { %v845_v8 = vsub.f32 1.0, %v844_v21  ;;  %v1396_v25 = vmax.f32 %v1394_v34, %v1395_v42  ;;  %v1104_v17 = vsel %vm1072_vm8, %v912_v59, 0.0  ;;  %v852_v12 = vand.u32 2147483647, %v3417_v10  ;;  %vm3086_vm3 = vmor %vm848_vm13, %vm849_vm7  ;;  %v3422_v59 = vld [vmem:[#allocation21_spill] sm:$0xff] }
 0x14c   :  { %v1208_v24 = vrot.slane %v1207_v37, 2  ;;  %v1382_v38 = vmax.f32 %v1380_v35, %v1381_v20  ;;  %v1256_v4 = vsel %vm1242_vm11, %v1183_v3, %v1176_v54  ;;  %v1191_v1 = vadd.f32 %v1105_v32, %v1104_v17 }
 0x14d   :  { %v846_v58 = vmul.f32 %v3418_v45, %v845_v8  ;;  %v1364_v46 = vrot.slane %v2975_v19, 1  ;;  %vm1074_vm15 = vcmp.eq.s32.totalorder %v2972_v27, 1  ;;  %v1257_v18 = vsel %vm1244_vm5, %v2988_v50, %v1256_v4 }
 0x14e   :  { %v1209_v15 = vadd.f32 %v1208_v24, %v1207_v37  ;;  %v914_v22 = vmul.f32 %v1780_v33, %v781_v41  ;;  %v1192_v29 = vrot.slane %v1191_v1, 4  ;;  %v854_v57 = vand.u32 2147483648, %v3417_v10  ;;  %v1031_v37 = vpop.permute.xlu1 %1030  ;;  %v3132_v24 = vpop.permute.xlu2 %1045 }
 0x14f   :  { %v847_v32 = vadd.f32 %v3418_v45, %v846_v58  ;;  %v1371_v49 = vrot.slane %v1370_v13, 1  ;;  %v1397_v16 = vrot.slane %v1396_v25, 2  ;;  %v1383_v9 = vrot.slane %v1382_v38, 2 }
 0x150   :  { %v859_v62 = vmul.f32 %v2700_v52, %v2622_v43  ;;  %v1193_v50 = vadd.f32 %v1192_v29, %v1191_v1  ;;  %vm853_vm6 = vcmp.eq.f32.partialorder %v852_v12, 8.507059e+37  ;;  %v855_v41 = vor.u32 1.1754944e-38, %v854_v57 }
 0x151   :  { %v851_v39 = vsel %vm3086_vm3, %v3418_v45, %v847_v32  ;;  %v1162_v42 = vadd.f32 %v1161_v23, %v2954_v5  ;;  %v1378_v30 = vrot.slane %v2970_v55, 1  ;;  %v1210_v40 = vrot.slane %v1209_v15, 1  ;;  %v1781_v45 = vld [vmem:[#allocation5 + $0xe8] sm:$0xff] }
 0x152   :  { %vm1079_vm9 = vcmp.eq.s32.totalorder %v3092_v56, 1  ;;  %v3105_v28 = vmax.f32 %v2975_v19, %v1364_v46  ;;  %v3109_v53 = vsel %vm1074_vm15, %v914_v22, 0.0  ;;  %v1295_v0 = vsel %vm1074_vm15, %v1780_v33, -inf  ;;  %v1782_v46 = vld [vmem:[#allocation5 + $0xc8] sm:$0xff] }
 0x153   :  { %v1194_v35 = vrot.slane %v1193_v50, 2  ;;  %v3113_v54 = vmax.f32 %v1370_v13, %v1371_v49  ;;  %v3115_v26 = vmax.f32 %v1396_v25, %v1397_v16  ;;  %v856_v5 = vsel %vm853_vm6, %v855_v41, %v851_v39  ;;  %v3421_v13 = vld [vmem:[#allocation15_spill] sm:$0xff] }
 0x154   :  { %v860_v23 = vsub.f32 1.0, %v859_v62  ;;  %v3117_v10 = vmax.f32 %v1382_v38, %v1383_v9  ;;  %v3121_v19 = vsel %vm1079_vm9, %v1781_v45, -inf  ;;  %v869_v21 = vand.u32 2147483648, %v2622_v43 }
 0x155   :  { %v1195_v14 = vadd.f32 %v1194_v35, %v1193_v50  ;;  %v3124_v27 = vadd.f32 %v1210_v40, %v1209_v15  ;;  %vm863_vm1 = vweird.f32 %v2622_v43  ;;  %vm864_vm2 = vweird.f32 %v2700_v52 }
 0x156   :  { %v784_v20 = vmul.f32 %v3422_v59, %v3421_v13  ;;  %v3130_v8 = vmul.f32 %v1781_v45, %v856_v5  ;;  %v867_v25 = vand.u32 2147483647, %v2622_v43  ;;  %v792_v17 = vand.u32 2147483647, %v3421_v13 }
 0x157   :  { %v1196_v3 = vrot.slane %v1195_v14, 1  ;;  %v861_v38 = vmul.f32 %v2700_v52, %v860_v23  ;;  %v794_v1 = vand.u32 2147483648, %v3421_v13  ;;  %vm1075_vm14 = vcmp.eq.s32.totalorder %v1031_v37, 1  ;;  %v1462_v23 = vpop.permute.xlu0 %1461 }
 0x158   :  { %v785_v4 = vsub.f32 1.0, %v784_v20  ;;  %v3138_v12 = vor.u32 1.1754944e-38, %v869_v21  ;;  %vm788_vm0 = vweird.f32 %v3421_v13  ;;  %v1296_v15 = vsel %vm1075_vm14, %v1782_v46, -inf }
 0x159   :  { %v1197_v58 = vadd.f32 %v1196_v3, %v1195_v14  ;;  %vm1080_vm8 = vcmp.eq.s32.totalorder %v3132_v24, 1  ;;  %vm789_vm10 = vweird.f32 %v3422_v59  ;;  %vm3145_vm4 = vcmp.eq.f32.partialorder %v792_v17, 8.507059e+37  ;;  %v3429_v3 = vld [vmem:[#allocation18_spill] sm:$0xff]  ;;  %v3430_v17 = vld [vmem:[#allocation25_spill] sm:$0xff]  ;;  %v1465_v24 = vpop.permute.xlu2 %1464 }
 0x15a   :  { %v786_v34 = vmul.f32 %v3422_v59, %v785_v4  ;;  %v1387_v22 = vmax.f32 %v1295_v0, %v1296_v15  ;;  %vm1248_vm13 = vcmask 1044484   ;;  %vm1250_vm7 = vcmask 1045509   ;;  %vm790_vm3 = vmor %vm788_vm0, %vm789_vm10 }
 0x15b   :  { %v3150_v29 = vsel %vm1246_vm12, %v1197_v58, %v1257_v18  ;;  %vm1252_vm15 = vcmask 1046534   ;;  %v795_v57 = vor.u32 1.1754944e-38, %v794_v1  ;;  %v1249_v16 = vsel %vm1248_vm13, %v2806_v51, %v2774_v11  ;;  %vm3180_vm0 = vmor %vm863_vm1, %vm864_vm2  ;;  %v3205_v1 = vld [vmem:[#allocation5 + $0xf0] sm:$0xff] }
 0x15c   :  { %v787_v32 = vadd.f32 %v3422_v59, %v786_v34  ;;  %v1388_v49 = vrot.slane %v1387_v22, 4  ;;  %v1251_v9 = vsel %vm1250_vm7, %v2960_v60, %v1249_v16  ;;  %vm1254_vm6 = vcmask 1047559  }
 0x15d   :  { %v1351_v18 = vmax.f32 %v2944_v7, %v1350_v36  ;;  %v1357_v62 = vrot.slane %v2830_v63, 1  ;;  %v1253_v41 = vsel %vm1252_vm15, %v1162_v42, %v1251_v9  ;;  %v1432_v11 = vsel %vm1244_vm5, %v2813_v44, %v2790_v61 }
 0x15e   :  { %v791_v50 = vsel %vm790_vm3, %v3422_v59, %v787_v32  ;;  %v1389_v39 = vmax.f32 %v1387_v22, %v1388_v49  ;;  %v862_v51 = vadd.f32 %v2700_v52, %v861_v38  ;;  %v1255_v40 = vsel %vm1254_vm6, %v2828_v2, %v1253_v41  ;;  %v3187_v2 = vpop.permute.xlu1 %1039 }
 0x15f   :  { %v796_v60 = vsel %vm3145_vm4, %v795_v57, %v791_v50  ;;  %v1433_v7 = vsel %vm1246_vm12, %v2821_v47, %v1432_v11  ;;  %v1358_v44 = vmax.f32 %v2830_v63, %v1357_v62  ;;  %v1474_v0 = vrot.slane %v1255_v40, 1  ;;  %1502 = vst [vmem:[#allocation8] sm:$0x1] %v1255_v40  ;;  %v1784_v62 = vld [vmem:[#allocation5 + $0xe0] sm:$0xff] }
 0x160   :  { %v915_v61 = vmul.f32 %v1782_v46, %v796_v60  ;;  %v1434_v42 = vsel %vm1248_vm13, %v2808_v6, %v1433_v7  ;;  %v1475_v35 = vrot.slane %v1255_v40, 2  ;;  %v1476_v5 = vrot.slane %v1255_v40, 3 }
 0x161   :  { %v1435_v47 = vsel %vm1250_vm7, %v2942_v48, %v1434_v42  ;;  %v1477_v43 = vrot.slane %v1255_v40, 4  ;;  %v1390_v45 = vrot.slane %v1389_v39, 2  ;;  %v1478_v63 = vrot.slane %v1255_v40, 5  ;;  %1503 = vst [vmem:[#allocation8 + $0x2] sm:$0x1] %v1474_v0 }
 0x162   :  { %v1107_v14 = vsel %vm1075_vm14, %v915_v61, 0.0  ;;  %v1436_v21 = vsel %vm1252_vm15, %v1351_v18, %v1435_v47  ;;  %v866_v6 = vsel %vm3180_vm0, %v2700_v52, %v862_v51  ;;  %vm3196_vm1 = vcmp.eq.f32.partialorder %v867_v25, 8.507059e+37  ;;  %1504 = vst [vmem:[#allocation8 + $0x4] sm:$0x1] %v1475_v35 }
 0x163   :  { %v1198_v48 = vadd.f32 %v1107_v14, %v3109_v53  ;;  %v1479_v59 = vrot.slane %v1255_v40, 6  ;;  %v1437_v37 = vsel %vm1254_vm6, %v1358_v44, %v1436_v21  ;;  %v1480_v20 = vrot.slane %v1255_v40, 7  ;;  %1505 = vst [vmem:[#allocation8 + $0x6] sm:$0x1] %v1476_v5 }
 0x164   :  { %vm1466_vm2 = vcmp.eq.s32.totalorder %v1462_v23, 1  ;;  %v829_v38 = vmul.f32 %v3430_v17, %v3429_v3  ;;  %v1385_v4 = vrot.slane %v3117_v10, 1  ;;  %v1301_v52 = vsel %vm1080_vm8, %v3205_v1, -inf  ;;  %1506 = vst [vmem:[#allocation8 + $0x8] sm:$0x1] %v1477_v43  ;;  %v1785_v43 = vld [vmem:[#allocation5 + $0xf8] sm:$0xff] }
 0x165   :  { %v1199_v25 = vrot.slane %v1198_v48, 4  ;;  %v1468_v53 = vsel %vm1466_vm2, %v1437_v37, 0.0  ;;  %v3213_v58 = vsel %vm1079_vm9, %v3130_v8, 0.0  ;;  %v3218_v46 = vsel %vm3196_vm1, %v3138_v12, %v866_v6  ;;  %1507 = vst [vmem:[#allocation8 + $0xa] sm:$0x1] %v1478_v63 }
 0x166   :  { %v3220_v15 = vmax.f32 %v1389_v39, %v1390_v45  ;;  %v1520_v34 = vrot.slane %v1468_v53, 1  ;;  %1508 = vst [vmem:[#allocation8 + $0xc] sm:$0x1] %v1479_v59  ;;  %v1521_v22 = vrot.slane %v1468_v53, 2  ;;  %v1522_v32 = vrot.slane %v1468_v53, 3  ;;  %v3431_v39 = vld [vmem:[#allocation23_spill] sm:$0xff]  ;;  %v1049_v11 = vpop.permute.xlu1 %1048 }
 0x167   :  { %v1200_v33 = vadd.f32 %v1199_v25, %v1198_v48  ;;  %vm833_vm14 = vweird.f32 %v3429_v3  ;;  %1509 = vst [vmem:[#allocation8 + $0xe] sm:$0x1] %v1480_v20  ;;  %v1523_v57 = vrot.slane %v1468_v53, 4  ;;  %v830_v56 = vsub.f32 1.0, %v829_v38 }
 0x168   :  { %vm834_vm9 = vweird.f32 %v3430_v17  ;;  %v837_v8 = vand.u32 2147483647, %v3429_v3  ;;  %v1524_v12 = vrot.slane %v1468_v53, 5  ;;  %1548 = vst [vmem:[#allocation8 + $0x1] sm:$0x1] %v1468_v53  ;;  %v839_v16 = vand.u32 2147483648, %v3429_v3 }
 0x169   :  { %v1201_v49 = vrot.slane %v1200_v33, 2  ;;  %vm1078_vm10 = vcmp.eq.s32.totalorder %v3187_v2, 1  ;;  %v1525_v9 = vrot.slane %v1468_v53, 6  ;;  %1549 = vst [vmem:[#allocation8 + $0x3] sm:$0x1] %v1520_v34  ;;  %v831_v18 = vmul.f32 %v3430_v17, %v830_v56  ;;  %vm835_vm3 = vmor %vm833_vm14, %vm834_vm9 }
 0x16a   :  { %v1299_v50 = vsel %vm1078_vm10, %v1784_v62, -inf  ;;  %v874_v41 = vmul.f32 %v2667_v31, %v3431_v39  ;;  %v1526_v60 = vrot.slane %v1468_v53, 7  ;;  %1550 = vst [vmem:[#allocation8 + $0x5] sm:$0x1] %v1521_v22  ;;  %vm3232_vm4 = vcmp.eq.f32.partialorder %v837_v8, 8.507059e+37 }
 0x16b   :  { %v1202_v51 = vadd.f32 %v1201_v49, %v1200_v33  ;;  %v1401_v7 = vmax.f32 %v1299_v50, %v3121_v19  ;;  %1551 = vst [vmem:[#allocation8 + $0x7] sm:$0x1] %v1522_v32  ;;  %v832_v36 = vadd.f32 %v3430_v17, %v831_v18  ;;  %v840_v61 = vor.u32 1.1754944e-38, %v839_v16 }
 0x16c   :  { %v875_v44 = vsub.f32 1.0, %v874_v41  ;;  %v882_v42 = vand.u32 2147483647, %v3431_v39  ;;  %1552 = vst [vmem:[#allocation8 + $0x9] sm:$0x1] %v1523_v57  ;;  %v884_v35 = vand.u32 2147483648, %v3431_v39  ;;  %vm879_vm1 = vweird.f32 %v2667_v31 }
 0x16d   :  { %v1203_v0 = vrot.slane %v1202_v51, 1  ;;  %v1402_v47 = vrot.slane %v1401_v7, 4  ;;  %vm1081_vm0 = vcmp.eq.s32.totalorder %v1049_v11, 1  ;;  %1553 = vst [vmem:[#allocation8 + $0xb] sm:$0x1] %v1524_v12  ;;  %v836_v19 = vsel %vm835_vm3, %v3430_v17, %v832_v36 }
 0x16e   :  { %v876_v5 = vmul.f32 %v2667_v31, %v875_v44  ;;  %v1302_v23 = vsel %vm1081_vm0, %v1785_v43, -inf  ;;  %v1392_v45 = vrot.slane %v3220_v15, 1  ;;  %1554 = vst [vmem:[#allocation8 + $0xd] sm:$0x1] %v1525_v9  ;;  %v841_v21 = vsel %vm3232_vm4, %v840_v61, %v836_v19 }
 0x16f   :  { %v1204_v14 = vadd.f32 %v1203_v0, %v1202_v51  ;;  %v1403_v63 = vmax.f32 %v1401_v7, %v1402_v47  ;;  %1555 = vst [vmem:[#allocation8 + $0xf] sm:$0x1] %v1526_v60  ;;  %v918_v6 = vmul.f32 %v1784_v62, %v841_v21  ;;  %vm878_vm2 = vweird.f32 %v3431_v39 }
 0x170   :  { %v877_v13 = vadd.f32 %v2667_v31, %v876_v5  ;;  %v1408_v48 = vmax.f32 %v1301_v52, %v1302_v23  ;;  %vm880_vm14 = vmor %vm878_vm2, %vm879_vm1  ;;  %vm883_vm9 = vcmp.eq.f32.partialorder %v882_v42, 8.507059e+37  ;;  %v885_v20 = vor.u32 1.1754944e-38, %v884_v35 }
 0x171   :  { %v1259_v59 = vsel %vm1248_vm13, %v1204_v14, %v3150_v29  ;;  %v1404_v37 = vrot.slane %v1403_v63, 2  ;;  %v1110_v17 = vsel %vm1078_vm10, %v918_v6, 0.0  ;;  %v1438_v52 = vsel %vm1242_vm11, %v3113_v54, %v3105_v28 }
 0x172   :  { %v1260_v3 = vsel %vm1250_vm7, %v3124_v27, %v1259_v59  ;;  %v881_v38 = vsel %vm880_vm14, %v2667_v31, %v877_v13  ;;  %v1409_v25 = vrot.slane %v1408_v48, 4  ;;  %v1212_v29 = vadd.f32 %v3213_v58, %v1110_v17 }
 0x173   :  { %v1405_v53 = vmax.f32 %v1403_v63, %v1404_v37  ;;  %v886_v34 = vsel %vm883_vm9, %v885_v20, %v881_v38  ;;  %v1386_v33 = vmax.f32 %v3117_v10, %v1385_v4  ;;  %v920_v27 = vmul.f32 %v3205_v1, %v3218_v46 }
 0x174   :  { %v921_v2 = vmul.f32 %v1785_v43, %v886_v34  ;;  %v1410_v22 = vmax.f32 %v1408_v48, %v1409_v25  ;;  %v1379_v31 = vmax.f32 %v2970_v55, %v1378_v30  ;;  %v1393_v32 = vmax.f32 %v3220_v15, %v1392_v45 }
 0x175   :  { %v1213_v28 = vrot.slane %v1212_v29, 4  ;;  %v1406_v54 = vrot.slane %v1405_v53, 1  ;;  %v1399_v58 = vrot.slane %v3115_v26, 1  ;;  %v1112_v57 = vsel %vm1080_vm8, %v920_v27, 0.0 }
 0x176   :  { %v1113_v10 = vsel %vm1081_vm0, %v921_v2, 0.0  ;;  %v1411_v4 = vrot.slane %v1410_v22, 2  ;;  %v1439_v1 = vsel %vm1244_vm5, %v1379_v31, %v1438_v52  ;;  %vm1467_vm11 = vcmp.eq.s32.totalorder %v1465_v24, 1 }
 0x177   :  { %v1214_v46 = vadd.f32 %v1213_v28, %v1212_v29  ;;  %v1219_v56 = vadd.f32 %v1113_v10, %v1112_v57  ;;  %v1440_v8 = vsel %vm1246_vm12, %v1386_v33, %v1439_v1  ;;  %v1407_v15 = vmax.f32 %v1405_v53, %v1406_v54 }
 0x178   :  { %v1412_v49 = vmax.f32 %v1410_v22, %v1411_v4  ;;  %v1441_v55 = vsel %vm1248_vm13, %v1393_v32, %v1440_v8  ;;  %v1400_v16 = vmax.f32 %v3115_v26, %v1399_v58 }
 0x179   :  { %v1215_v30 = vrot.slane %v1214_v46, 2  ;;  %v1220_v12 = vrot.slane %v1219_v56, 4 }
 0x17a   :  { %v1413_v9 = vrot.slane %v1412_v49, 1  ;;  %v1442_v50 = vsel %vm1250_vm7, %v1400_v16, %v1441_v55 }
 0x17b   :  { %v1216_v18 = vadd.f32 %v1215_v30, %v1214_v46  ;;  %v1221_v62 = vadd.f32 %v1220_v12, %v1219_v56  ;;  %v1443_v11 = vsel %vm1252_vm15, %v1407_v15, %v1442_v50 }
 0x17c   :  { %v1414_v39 = vmax.f32 %v1412_v49, %v1413_v9 }
 0x17d   :  { %v1217_v41 = vrot.slane %v1216_v18, 1  ;;  %v1222_v51 = vrot.slane %v1221_v62, 2 }
 0x17e   :  { %v1444_v60 = vsel %vm1254_vm6, %v1414_v39, %v1443_v11 }
 0x17f   :  { %v1218_v40 = vadd.f32 %v1217_v41, %v1216_v18  ;;  %v1223_v7 = vadd.f32 %v1222_v51, %v1221_v62  ;;  %v1469_v36 = vsel %vm1467_vm11, %v1444_v60, 0.0 }
 0x180   :  { %v1527_v61 = vrot.slane %v1469_v36, 1  ;;  %v1528_v44 = vrot.slane %v1469_v36, 2  ;;  %v1529_v26 = vrot.slane %v1469_v36, 3  ;;  %1556 = vst [vmem:[#allocation8 + $0x11] sm:$0x1] %v1469_v36  ;;  %v1530_v47 = vrot.slane %v1469_v36, 4 }
 0x181   :  { %v1261_v42 = vsel %vm1252_vm15, %v1218_v40, %v1260_v3  ;;  %v1224_v0 = vrot.slane %v1223_v7, 1  ;;  %v1531_v19 = vrot.slane %v1469_v36, 5  ;;  %v1532_v13 = vrot.slane %v1469_v36, 6 }
 0x182   :  { %1557 = vst [vmem:[#allocation8 + $0x13] sm:$0x1] %v1527_v61  ;;  %v1533_v48 = vrot.slane %v1469_v36, 7 }
 0x183   :  { %v1225_v35 = vadd.f32 %v1224_v0, %v1223_v7  ;;  %1558 = vst [vmem:[#allocation8 + $0x15] sm:$0x1] %v1528_v44 }
 0x184   :  { %1559 = vst [vmem:[#allocation8 + $0x17] sm:$0x1] %v1529_v26 }
 0x185   :  { %v1262_v5 = vsel %vm1254_vm6, %v1225_v35, %v1261_v42  ;;  %1560 = vst [vmem:[#allocation8 + $0x19] sm:$0x1] %v1530_v47 }
 0x186   :  { %v1481_v43 = vrot.slane %v1262_v5, 1  ;;  %v1482_v23 = vrot.slane %v1262_v5, 2  ;;  %v1483_v14 = vrot.slane %v1262_v5, 3  ;;  %1510 = vst [vmem:[#allocation8 + $0x10] sm:$0x1] %v1262_v5  ;;  %v1484_v45 = vrot.slane %v1262_v5, 4 }
 0x187   :  { %1561 = vst [vmem:[#allocation8 + $0x1b] sm:$0x1] %v1531_v19  ;;  %v1485_v21 = vrot.slane %v1262_v5, 5  ;;  %v1486_v63 = vrot.slane %v1262_v5, 6  ;;  %v1487_v6 = vrot.slane %v1262_v5, 7 }
 0x188   :  { %1511 = vst [vmem:[#allocation8 + $0x12] sm:$0x1] %v1481_v43 }
 0x189   :  { %1512 = vst [vmem:[#allocation8 + $0x14] sm:$0x1] %v1482_v23 }
 0x18a   :  { %1513 = vst [vmem:[#allocation8 + $0x16] sm:$0x1] %v1483_v14 }
 0x18b   :  { %1514 = vst [vmem:[#allocation8 + $0x18] sm:$0x1] %v1484_v45 }
 0x18c   :  { %1515 = vst [vmem:[#allocation8 + $0x1a] sm:$0x1] %v1485_v21 }
 0x18d   :  { %1516 = vst [vmem:[#allocation8 + $0x1c] sm:$0x1] %v1486_v63 }
 0x18e   :  { %1517 = vst [vmem:[#allocation8 + $0x1e] sm:$0x1] %v1487_v6 }
 0x18f   :  { %1562 = vst [vmem:[#allocation8 + $0x1d] sm:$0x1] %v1532_v13 }
 0x190   :  { %1563 = vst [vmem:[#allocation8 + $0x1f] sm:$0x1] %v1533_v48 }
 0x191   :  { %1576 = dma.vmem_to_hbm [thread:$0]  %s1569_s3, 512, %s1571_s30, [#allocation7], %s1843_s5, %s1843_s5, %s1844_s6  }
 0x192   :  { %1836 = dma.done.wait [#allocation7], 512  }
 0x193   :  { %1837 = vsyncadd [#allocation7], 4294966784 }
 0x194   :  { %1581 = vsyncpa [#allocation6], 1 }
 0x195   :  { %1582 = vsyncpa [#allocation7], 1 }

</bundles_post_ra>
